<compile_context>
chip_gen: v7x
topology: tpu7x:2x2x1
jax: 0.10.0
libtpu: 0.0.40
codegen_flags: <defaults>
</compile_context>

<pallas_src>
import functools

import jax
import jax.numpy as jnp
from jax.experimental import pallas as pl
from jax.experimental.pallas import tpu as pltpu

_EPS = 1e-5
D = 128

# (name, cin, cout, kernel, stride, pad) for the BN+leaky conv stack
CONV_CFG = [
    ("conv1", 1,           D,           4, 2, 1),
    ("conv2", D,           2 * D,       4, 2, 1),
    ("conv3", 2 * D,       2 * D,       4, 2, 1),
    ("conv4", 2 * D,       4 * D,       4, 2, 1),
    ("conv5", 4 * D + 256, 4 * D + 256, 4, 2, 1),
    ("conv6", 4 * D + 256, 6 * D,       4, 2, 1),
    ("conv7", 6 * D,       4 * D,       4, 2, 1),
    ("conv8", 4 * D,       4 * D,       8, 4, 3),
    ("conv9", 4 * D,       2 * D,       8, 4, 3),
]


# ---------------------------------------------------------------------------
# Capability probes (single-buffering support, MXU tile preference)
# ---------------------------------------------------------------------------
_SINGLE_BUFFER = None
_PREFER_256 = None


def _single_buffer_supported():
    """Probe whether BlockSpec(pipeline_mode=pl.Buffered(1)) works here."""
    global _SINGLE_BUFFER
    if _SINGLE_BUFFER is None:
        ok = False
        try:
            if hasattr(pl, "Buffered"):
                def _k(x_ref, o_ref):
                    o_ref[...] = x_ref[...] + 1.0

                f = pl.pallas_call(
                    _k,
                    out_shape=jax.ShapeDtypeStruct((16, 128), jnp.float32),
                    grid=(2,),
                    in_specs=[pl.BlockSpec((8, 128), lambda i: (0, 0),
                                           pipeline_mode=pl.Buffered(1))],
                    out_specs=pl.BlockSpec((8, 128), lambda i: (i, 0)),
                )
                jax.block_until_ready(f(jnp.zeros((8, 128), jnp.float32)))
                ok = True
        except Exception:
            ok = False
        _SINGLE_BUFFER = ok
    return _SINGLE_BUFFER


def _prefer_256_tile():
    """256-row MXU tiles only on chips with a 256x256 MXU (v6e / v7x)."""
    global _PREFER_256
    if _PREFER_256 is None:
        try:
            kind = jax.devices()[0].device_kind.lower()
            _PREFER_256 = not any(v in kind for v in ("v2", "v3", "v4", "v5"))
        except Exception:
            _PREFER_256 = True
    return _PREFER_256


def _pick_tile_c(cout):
    # 256-row tiles only when they fill the big MXU AND >=2 grid steps remain
    # (keeps both v7x TensorCores busy via dimension_semantics=("parallel",)).
    if cout % 256 == 0 and cout >= 512 and _prefer_256_tile():
        return 256
    if cout % 128 == 0:
        return 128
    return cout


# ---------------------------------------------------------------------------
# Pallas kernel: fused conv (per-tap matmuls) + BatchNorm + activation
# ---------------------------------------------------------------------------
def _conv_bn_act_kernel(w_ref, x_ref, p_ref, o_ref, *, act, use_bn):
    # w_ref: (taps, tile_c, cin_eff) bf16      (per-tap LHS tiles)
    # x_ref: (B, cin_eff, U)         bf16      (resident phase-split activation)
    # p_ref: (tile_c, 3)             f32       [conv bias | BN gamma | BN beta]
    # o_ref: (tile_c, B*T)
    taps, tile_c, cin_eff = w_ref.shape
    bsz = x_ref.shape[0]
    t_len = o_ref.shape[-1] // bsz
    use_mxu = cin_eff >= 8

    parts = []
    for b in range(bsz):
        xb = x_ref[b]                               # (cin_eff, U) — one load / batch
        if not use_mxu:
            xb = xb.astype(jnp.float32)
        acc = jnp.zeros((tile_c, t_len), jnp.float32)
        for m in range(taps):
            xs = xb[:, m:m + t_len]                 # static contiguous slice
            if use_mxu:
                acc = acc + jnp.dot(w_ref[m], xs,
                                    preferred_element_type=jnp.float32)
            else:
                # conv1-style depth-4 contraction: VPU broadcast MACs, skip MXU.
                w_m = w_ref[m].astype(jnp.float32)  # (tile_c, cin_eff), tiny
                for c in range(cin_eff):
                    acc = acc + w_m[:, c:c + 1] * xs[c:c + 1, :]
        parts.append(acc)
    y = parts[0] if bsz == 1 else jnp.concatenate(parts, axis=-1)  # (tile_c, B*T) f32

    if use_bn:
        # PyTorch train-mode BatchNorm1d: biased stats over batch*time.
        # The conv bias is a per-channel constant and cancels exactly in the
        # mean subtraction, so it is skipped.  Stats use one fused read
        # (sum + sum-of-squares in f32, variance clamped at 0).
        inv_n = 1.0 / y.shape[-1]
        s1 = jnp.sum(y, axis=-1, keepdims=True)
        s2 = jnp.sum(y * y, axis=-1, keepdims=True)
        mean = s1 * inv_n
        var = jnp.maximum(s2 * inv_n - mean * mean, 0.0)
        scale = p_ref[:, 1:2] * jax.lax.rsqrt(var + _EPS)   # gamma / sqrt(var+eps)
        y = y * scale + (p_ref[:, 2:3] - mean * scale)      # + beta - mean*scale
    else:
        y = y + p_ref[:, 0:1]                                # conv bias

    if act == "leaky":
        y = jnp.where(y >= 0.0, y, 0.2 * y)
    elif act == "tanh":
        y = jnp.tanh(y)
    elif act == "sigmoid":
        y = 1.0 / (1.0 + jnp.exp(-y))
    o_ref[...] = y.astype(o_ref.dtype)


def _fused_conv_bn_act(w3, x3, params3, *, t_len, act, use_bn, out_dtype):
    """w3: (taps, Cout, Cin_eff), x3: (B, Cin_eff, U), params3: (Cout, 3)."""
    taps, cout, cin_eff = w3.shape
    bsz, _, u_len = x3.shape
    n_out = bsz * t_len
    tile_c = _pick_tile_c(cout)
    single_buf = _single_buffer_supported()

    w_bf = w3.astype(jnp.bfloat16)
    x_bf = x3.astype(jnp.bfloat16)

    out_bytes = jnp.dtype(out_dtype).itemsize
    est = ((1 if single_buf else 2) * bsz * cin_eff * u_len * 2   # resident activation
           + 2 * taps * tile_c * cin_eff * 2                      # W tile (double buffered)
           + 2 * tile_c * 3 * 4                                   # packed bias/gamma/beta
           + 2 * tile_c * n_out * out_bytes                       # output tile (2 buffers)
           + 3 * tile_c * n_out * 4                               # f32 epilogue temporaries
           + 2 * cin_eff * u_len * 2)                             # in-kernel xb value + slice
    vmem_limit = int(max(est + (4 << 20), 32 << 20))

    if single_buf:
        x_spec = pl.BlockSpec((bsz, cin_eff, u_len), lambda i: (0, 0, 0),
                              pipeline_mode=pl.Buffered(1))
    else:
        x_spec = pl.BlockSpec((bsz, cin_eff, u_len), lambda i: (0, 0, 0))

    kernel = functools.partial(_conv_bn_act_kernel, act=act, use_bn=use_bn)
    return pl.pallas_call(
        kernel,
        out_shape=jax.ShapeDtypeStruct((cout, n_out), out_dtype),
        grid=(cout // tile_c,),
        in_specs=[
            pl.BlockSpec((taps, tile_c, cin_eff), lambda i: (0, i, 0)),  # W per tile
            x_spec,                                                      # resident x
            pl.BlockSpec((tile_c, 3), lambda i: (i, 0)),                 # bias/gamma/beta
        ],
        out_specs=pl.BlockSpec((tile_c, n_out), lambda i: (i, 0)),
        compiler_params=pltpu.CompilerParams(
            dimension_semantics=("parallel",),       # megacore over Cout tiles
            vmem_limit_bytes=vmem_limit,
        ),
    )(w_bf, x_bf, params3)


# ---------------------------------------------------------------------------
# Layer wrappers (channels-major glue: padding / phase split / interleave)
# ---------------------------------------------------------------------------
def conv1d_cm(x, w, bias, gamma, beta, *, k, s, p_l, p_r, act, use_bn, out_dtype):
    """x: (Cin, B, L) channels-major, w: (Cout, Cin, K). Returns (Cout, B, T_out)."""
    cin, bsz, length = x.shape
    cout = w.shape[0]
    assert p_l >= 0 and p_r >= 0 and k % s == 0
    taps = k // s
    lp0 = length + p_l + p_r
    t_out = (lp0 - k) // s + 1
    extra = (-lp0) % s                       # pad so the phase split divides evenly
    xpad = jnp.pad(x, ((0, 0), (0, 0), (p_l, p_r + extra)))
    u = (lp0 + extra) // s

    if s > 1:
        # Phase split (one 1x pass): xps[b, ci*s + r, u'] = xpad[ci, b, u'*s + r]
        xps = (xpad.reshape(cin, bsz, u, s)
                   .transpose(1, 0, 3, 2)
                   .reshape(bsz, cin * s, u))
        # W'[co, ci*s + r, m] = W[co, ci, m*s + r]
        wps = (w.reshape(cout, cin, taps, s)
                .transpose(0, 1, 3, 2)
                .reshape(cout, cin * s, taps))
    else:
        xps = jnp.transpose(xpad, (1, 0, 2))             # (B, Cin, U)
        wps = w

    w3 = jnp.transpose(wps, (2, 0, 1))                   # (taps, Cout, Cin_eff)
    params3 = jnp.stack([bias, gamma, beta], axis=-1).astype(jnp.float32)
    y = _fused_conv_bn_act(w3, xps, params3, t_len=t_out, act=act,
                           use_bn=use_bn, out_dtype=out_dtype)
    return y.reshape(cout, bsz, t_out)


def conv_transpose1d_cm(x, w, bias, *, k, s, p, act, out_dtype):
    """Polyphase ConvTranspose1d. x: (Cin, B, L), w: (Cin, Cout, K) (PyTorch layout).

    y[b, co, s*u + r] = bias[co]
        + sum_{ci, m} x[b, ci, u + q_r - m] * W[ci, co, s*m + rho_r]
    with q_r = (r+p)//s, rho_r = (r+p)%s  ->  one stacked stride-1 conv with a
    small window and s*Cout output channels; phases interleave along time.
    """
    cin, bsz, length = x.shape
    cout = w.shape[1]
    assert k % s == 0
    taps = k // s
    lout = (length - 1) * s - 2 * p + k
    assert lout == s * length, "polyphase path assumes Lout == s*L"
    q = [(r + p) // s for r in range(s)]
    rho = [(r + p) % s for r in range(s)]
    off_min = min(q) - (taps - 1)
    off_max = max(q)
    window = off_max - off_min + 1
    assert -off_min >= 0 and off_max >= 0

    w_st = jnp.zeros((s, cout, cin, window), jnp.float32)
    for r in range(s):
        for m in range(taps):
            w_st = w_st.at[r, :, :, q[r] - m - off_min].set(w[:, :, s * m + rho[r]].T)
    w_st = w_st.reshape(s * cout, cin, window)
    b_st = jnp.tile(bias, s)
    ones = jnp.ones((s * cout,), jnp.float32)
    zeros = jnp.zeros((s * cout,), jnp.float32)

    y_st = conv1d_cm(x, w_st, b_st, ones, zeros,
                     k=window, s=1, p_l=-off_min, p_r=off_max,
                     act=act, use_bn=False, out_dtype=out_dtype)   # (s*Cout, B, L)
    # interleave phases: y[co, b, s*u + r] = y_st[r*Cout + co, b, u]
    return (y_st.reshape(s, cout, bsz, length)
                .transpose(1, 2, 3, 0)
                .reshape(cout, bsz, length * s))


# ---------------------------------------------------------------------------
# Parameters (deterministic synthetic init, shapes from the PyTorch __init__)
# ---------------------------------------------------------------------------
def init_params(seed=42):
    key = jax.random.PRNGKey(seed)

    def nxt():
        nonlocal key
        key, sub = jax.random.split(key)
        return sub

    params = {}
    # ConvTranspose1d weights: (Cin, Cout, K)
    params["unconv1_w"] = 0.02 * jax.random.normal(nxt(), (80, 256, 16), jnp.float32)
    params["unconv1_b"] = jnp.zeros((256,), jnp.float32)
    params["unconv2_w"] = 0.02 * jax.random.normal(nxt(), (256, 256, 16), jnp.float32)
    params["unconv2_b"] = jnp.zeros((256,), jnp.float32)
    for name, cin, cout, k, _, _ in CONV_CFG:
        params[name + "_w"] = 0.02 * jax.random.normal(nxt(), (cout, cin, k), jnp.float32)
        params[name + "_b"] = jnp.zeros((cout,), jnp.float32)
        params[name + "_g"] = jnp.ones((cout,), jnp.float32)       # BN gamma
        params[name + "_beta"] = jnp.zeros((cout,), jnp.float32)   # BN beta
    params["conv10_w"] = 0.02 * jax.random.normal(nxt(), (1, 256, 4), jnp.float32)
    params["conv10_b"] = jnp.zeros((1,), jnp.float32)
    return params


# ---------------------------------------------------------------------------
# Forward pass (mirrors discriminator.forward)
# ---------------------------------------------------------------------------
def discriminator_forward(params, wav, mel):
    # wav: (B, 1, T_wav)   mel: (B, T_mel, 80)   with T_wav == 256 * T_mel
    act_dt = jnp.bfloat16                        # bf16 intermediate activations

    m = jnp.transpose(mel, (2, 0, 1))            # channels-major (80, B, T_mel)
    m = conv_transpose1d_cm(m, params["unconv1_w"], params["unconv1_b"],
                            k=16, s=4, p=6, act="tanh", out_dtype=act_dt)
    m = conv_transpose1d_cm(m, params["unconv2_w"], params["unconv2_b"],
                            k=16, s=4, p=6, act="tanh", out_dtype=act_dt)

    x = jnp.transpose(wav, (1, 0, 2))            # (1, B, T_wav)
    for name, _, _, k, s, p in CONV_CFG[:4]:
        x = conv1d_cm(x, params[name + "_w"], params[name + "_b"],
                      params[name + "_g"], params[name + "_beta"],
                      k=k, s=s, p_l=p, p_r=p, act="leaky", use_bn=True,
                      out_dtype=act_dt)

    x = jnp.concatenate([x, m], axis=0)          # channel concat: (768, B, T)

    for name, _, _, k, s, p in CONV_CFG[4:]:
        x = conv1d_cm(x, params[name + "_w"], params[name + "_b"],
                      params[name + "_g"], params[name + "_beta"],
                      k=k, s=s, p_l=p, p_r=p, act="leaky", use_bn=True,
                      out_dtype=act_dt)

    ones1 = jnp.ones((1,), jnp.float32)
    zeros1 = jnp.zeros((1,), jnp.float32)
    x = conv1d_cm(x, params["conv10_w"], params["conv10_b"], ones1, zeros1,
                  k=4, s=1, p_l=0, p_r=0, act="sigmoid", use_bn=False,
                  out_dtype=jnp.float32)         # (1, B, 1)
    return jnp.transpose(x, (1, 0, 2))           # (B, 1, 1)


# ---------------------------------------------------------------------------
# Numerical self-check against lax references (bf16-quantization matched)
# ---------------------------------------------------------------------------
def _q(a):
    return a.astype(jnp.bfloat16).astype(jnp.float32)


def _ref_conv1d(x_bcl, w, b, stride, pad):
    y = jax.lax.conv_general_dilated(
        x_bcl, w, window_strides=(stride,), padding=[(pad, pad)],
        dimension_numbers=("NCH", "OIH", "NCH"),
        precision=jax.lax.Precision.HIGHEST)
    return y + b[None, :, None]


def _ref_bn_leaky(y, gamma, beta, eps=_EPS, slope=0.2):
    mean = jnp.mean(y, axis=(0, 2), keepdims=True)
    var = jnp.mean((y - mean) ** 2, axis=(0, 2), keepdims=True)
    yn = gamma[None, :, None] * (y - mean) / jnp.sqrt(var + eps) + beta[None, :, None]
    return jnp.where(yn >= 0, yn, slope * yn)


def _ref_conv_transpose1d(x_bcl, w_iok, b, stride, pad):
    k = w_iok.shape[-1]
    w_oik = jnp.flip(jnp.transpose(w_iok, (1, 0, 2)), axis=-1)
    y = jax.lax.conv_general_dilated(
        x_bcl, w_oik, window_strides=(1,), padding=[(k - 1 - pad, k - 1 - pad)],
        lhs_dilation=(stride,), dimension_numbers=("NCH", "OIH", "NCH"),
        precision=jax.lax.Precision.HIGHEST)
    return y + b[None, :, None]


def _self_check():
    key = jax.random.PRNGKey(0)
    ks = jax.random.split(key, 8)

    # --- Conv1d + BatchNorm(train) + leaky(0.2), MXU path -------------------
    b_, cin, cout, length, k, s, p = 2, 16, 128, 64, 4, 2, 1
    x = jax.random.normal(ks[0], (b_, cin, length), jnp.float32)
    w = 0.1 * jax.random.normal(ks[1], (cout, cin, k), jnp.float32)
    bias = 0.1 * jax.random.normal(ks[2], (cout,), jnp.float32)
    gamma = 1.0 + 0.1 * jax.random.normal(ks[3], (cout,), jnp.float32)
    beta = 0.1 * jax.random.normal(ks[4], (cout,), jnp.float32)
    got = conv1d_cm(jnp.transpose(x, (1, 0, 2)), w, bias, gamma, beta,
                    k=k, s=s, p_l=p, p_r=p, act="leaky", use_bn=True,
                    out_dtype=jnp.float32)
    want = _ref_bn_leaky(_ref_conv1d(_q(x), _q(w), bias, s, p), gamma, beta)
    err = float(jnp.max(jnp.abs(jnp.transpose(got, (1, 0, 2)) - want)))
    assert err < 2e-2, f"conv+bn+leaky mismatch: {err}"

    # --- Conv1d VPU path (cin_eff < 8, like conv1) ---------------------------
    x1 = jax.random.normal(ks[5], (b_, 1, length), jnp.float32)
    w1 = 0.1 * jax.random.normal(ks[6], (cout, 1, k), jnp.float32)
    got1 = conv1d_cm(jnp.transpose(x1, (1, 0, 2)), w1, bias, gamma, beta,
                     k=k, s=s, p_l=p, p_r=p, act="leaky", use_bn=True,
                     out_dtype=jnp.float32)
    want1 = _ref_bn_leaky(_ref_conv1d(_q(x1), _q(w1), bias, s, p), gamma, beta)
    err1 = float(jnp.max(jnp.abs(jnp.transpose(got1, (1, 0, 2)) - want1)))
    assert err1 < 2e-2, f"conv(VPU)+bn+leaky mismatch: {err1}"

    # --- Polyphase ConvTranspose1d + tanh ------------------------------------
    cin_t, cout_t, lt, kt, st, pt = 16, 128, 8, 16, 4, 6
    xt = jax.random.normal(ks[7], (b_, cin_t, lt), jnp.float32)
    wt = 0.1 * jax.random.normal(ks[0], (cin_t, cout_t, kt), jnp.float32)
    bt = 0.1 * jax.random.normal(ks[1], (cout_t,), jnp.float32)
    got_t = conv_transpose1d_cm(jnp.transpose(xt, (1, 0, 2)), wt, bt,
                                k=kt, s=st, p=pt, act="tanh",
                                out_dtype=jnp.float32)
    want_t = jnp.tanh(_ref_conv_transpose1d(_q(xt), _q(wt), bt, st, pt))
    err_t = float(jnp.max(jnp.abs(jnp.transpose(got_t, (1, 0, 2)) - want_t)))
    assert err_t < 2e-2, f"conv_transpose+tanh mismatch: {err_t}"


if __name__ == "__main__":
    # Warm capability probes outside the jitted trace, then validate kernels.
    _single_buffer_supported()
    _prefer_256_tile()
    _self_check()

    B = 2
    T_MEL = 32                 # mel frames
    T_WAV = 256 * T_MEL        # so conv4 output length == 16 * T_MEL

    key = jax.random.PRNGKey(0)
    k_wav, k_mel = jax.random.split(key)
    wav = jax.random.normal(k_wav, (B, 1, T_WAV), jnp.float32)
    mel = jax.random.normal(k_mel, (B, T_MEL, 80), jnp.float32)

    params = init_params(42)
    fwd = jax.jit(discriminator_forward)
    out = jax.block_until_ready(fwd(params, wav, mel))

    assert out.shape == (B, 1, 1), out.shape
    assert bool(jnp.all(jnp.isfinite(out)))
    assert bool(jnp.all((out >= 0.0) & (out <= 1.0)))
    print("KERNEL_OK")
</pallas_src>

<mosaic_0001>
module attributes {stable_mosaic.version = 11 : i64} {
  func.func @_k(%arg0: i32, %arg1: memref<8x128xf32, #tpu.memory_space<vmem>>, %arg2: memref<8x128xf32, #tpu.memory_space<vmem>>) attributes {dimension_semantics = [#tpu.dimension_semantics<arbitrary>], iteration_bounds = array<i64: 2>, scalar_prefetch = 0 : i64, scratch_operands = 0 : i64, tpu.core_type = #tpu.core_type<tc>, window_params = [{pipeline_mode = #tpu.pipeline_mode<synchronous>, transform_indices = @transform_0, window_bounds = array<i64: 8, 128>}, {transform_indices = @transform_1, window_bounds = array<i64: 8, 128>}]} {
    %c0 = arith.constant 0 : index
    %c0_0 = arith.constant 0 : index
    %0 = vector.load %arg1[%c0, %c0_0] : memref<8x128xf32, #tpu.memory_space<vmem>>, vector<8x128xf32>
    %cst = arith.constant 1.000000e+00 : f32
    %1 = vector.broadcast %cst : f32 to vector<8x128xf32>
    %2 = arith.addf %0, %1 : vector<8x128xf32>
    %c0_1 = arith.constant 0 : index
    %c0_2 = arith.constant 0 : index
    %3 = vector.load %arg2[%c0_1, %c0_2] : memref<8x128xf32, #tpu.memory_space<vmem>>, vector<8x128xf32>
    tpu.vector_store %arg2[%c0_1, %c0_2], %2 {strides = array<i32>} : memref<8x128xf32, #tpu.memory_space<vmem>>, vector<8x128xf32>,
    return
  }
  func.func @transform_0(%arg0: i32) -> (i32, i32) {
    %c0_i32 = arith.constant 0 : i32
    %c0_i32_0 = arith.constant 0 : i32
    %c0_i32_1 = arith.constant 0 : i32
    return %c0_i32, %c0_i32_0 : i32, i32
  }
  func.func @transform_1(%arg0: i32) -> (i32, i32) {
    %c0_i32 = arith.constant 0 : i32
    %c0_i32_0 = arith.constant 0 : i32
    return %arg0, %c0_i32 : i32, i32
  }
}

module attributes {stable_mosaic.version = 11 : i64} {
  func.func @_conv_bn_act_kernel(%arg0: i32, %arg1: memref<2x128x32xbf16, #tpu.memory_space<vmem>>, %arg2: memref<2x32x33xbf16, #tpu.memory_space<vmem>>, %arg3: memref<128x3xf32, #tpu.memory_space<vmem>>, %arg4: memref<128x64xf32, #tpu.memory_space<vmem>>) attributes {dimension_semantics = [#tpu.dimension_semantics<parallel>], iteration_bounds = array<i64: 1>, scalar_prefetch = 0 : i64, scratch_operands = 0 : i64, tpu.core_type = #tpu.core_type<tc>, window_params = [{transform_indices = @transform_0, window_bounds = array<i64: 2, 128, 32>}, {pipeline_mode = #tpu.pipeline_mode<synchronous>, transform_indices = @transform_1, window_bounds = array<i64: 2, 32, 33>}, {transform_indices = @transform_2, window_bounds = array<i64: 128, 3>}, {transform_indices = @transform_3, window_bounds = array<i64: 128, 64>}]} {
    %c0 = arith.constant 0 : index
    %c0_0 = arith.constant 0 : index
    %c0_1 = arith.constant 0 : index
    %0 = vector.load %arg2[%c0, %c0_0, %c0_1] : memref<2x32x33xbf16, #tpu.memory_space<vmem>>, vector<1x32x33xbf16>
    %1 = vector.shape_cast %0 : vector<1x32x33xbf16> to vector<32x33xbf16>
    %cst = arith.constant 0.000000e+00 : f32
    %2 = vector.broadcast %cst : f32 to vector<128x32xf32>
    %3 = vector.extract_strided_slice %1 {offsets = [0, 0], sizes = [32, 32], strides = [1, 1]} : vector<32x33xbf16> to vector<32x32xbf16>
    %c0_2 = arith.constant 0 : index
    %c0_3 = arith.constant 0 : index
    %c0_4 = arith.constant 0 : index
    %4 = vector.load %arg1[%c0_2, %c0_3, %c0_4] : memref<2x128x32xbf16, #tpu.memory_space<vmem>>, vector<1x128x32xbf16>
    %5 = vector.shape_cast %4 : vector<1x128x32xbf16> to vector<128x32xbf16>
    %cst_5 = arith.constant dense<0.000000e+00> : vector<128x32xf32>
    %6 = tpu.matmul %5, %3, %cst_5 {dimension_numbers = #tpu.dot_dimension_numbers<[1], [0], [0], [1], [0, 0, 1, 1], [], []>} : vector<128x32xbf16>, vector<32x32xbf16>, vector<128x32xf32> -> vector<128x32xf32>
    %7 = arith.addf %2, %6 : vector<128x32xf32>
    %8 = vector.extract_strided_slice %1 {offsets = [0, 1], sizes = [32, 32], strides = [1, 1]} : vector<32x33xbf16> to vector<32x32xbf16>
    %c1 = arith.constant 1 : index
    %c0_6 = arith.constant 0 : index
    %c0_7 = arith.constant 0 : index
    %9 = vector.load %arg1[%c1, %c0_6, %c0_7] : memref<2x128x32xbf16, #tpu.memory_space<vmem>>, vector<1x128x32xbf16>
    %10 = vector.shape_cast %9 : vector<1x128x32xbf16> to vector<128x32xbf16>
    %cst_8 = arith.constant dense<0.000000e+00> : vector<128x32xf32>
    %11 = tpu.matmul %10, %8, %cst_8 {dimension_numbers = #tpu.dot_dimension_numbers<[1], [0], [0], [1], [0, 0, 1, 1], [], []>} : vector<128x32xbf16>, vector<32x32xbf16>, vector<128x32xf32> -> vector<128x32xf32>
    %12 = arith.addf %7, %11 : vector<128x32xf32>
    %c1_9 = arith.constant 1 : index
    %c0_10 = arith.constant 0 : index
    %c0_11 = arith.constant 0 : index
    %13 = vector.load %arg2[%c1_9, %c0_10, %c0_11] : memref<2x32x33xbf16, #tpu.memory_space<vmem>>, vector<1x32x33xbf16>
    %14 = vector.shape_cast %13 : vector<1x32x33xbf16> to vector<32x33xbf16>
    %cst_12 = arith.constant 0.000000e+00 : f32
    %15 = vector.broadcast %cst_12 : f32 to vector<128x32xf32>
    %16 = vector.extract_strided_slice %14 {offsets = [0, 0], sizes = [32, 32], strides = [1, 1]} : vector<32x33xbf16> to vector<32x32xbf16>
    %c0_13 = arith.constant 0 : index
    %c0_14 = arith.constant 0 : index
    %c0_15 = arith.constant 0 : index
    %17 = vector.load %arg1[%c0_13, %c0_14, %c0_15] : memref<2x128x32xbf16, #tpu.memory_space<vmem>>, vector<1x128x32xbf16>
    %18 = vector.shape_cast %17 : vector<1x128x32xbf16> to vector<128x32xbf16>
    %cst_16 = arith.constant dense<0.000000e+00> : vector<128x32xf32>
    %19 = tpu.matmul %18, %16, %cst_16 {dimension_numbers = #tpu.dot_dimension_numbers<[1], [0], [0], [1], [0, 0, 1, 1], [], []>} : vector<128x32xbf16>, vector<32x32xbf16>, vector<128x32xf32> -> vector<128x32xf32>
    %20 = arith.addf %15, %19 : vector<128x32xf32>
    %21 = vector.extract_strided_slice %14 {offsets = [0, 1], sizes = [32, 32], strides = [1, 1]} : vector<32x33xbf16> to vector<32x32xbf16>
    %c1_17 = arith.constant 1 : index
    %c0_18 = arith.constant 0 : index
    %c0_19 = arith.constant 0 : index
    %22 = vector.load %arg1[%c1_17, %c0_18, %c0_19] : memref<2x128x32xbf16, #tpu.memory_space<vmem>>, vector<1x128x32xbf16>
    %23 = vector.shape_cast %22 : vector<1x128x32xbf16> to vector<128x32xbf16>
    %cst_20 = arith.constant dense<0.000000e+00> : vector<128x32xf32>
    %24 = tpu.matmul %23, %21, %cst_20 {dimension_numbers = #tpu.dot_dimension_numbers<[1], [0], [0], [1], [0, 0, 1, 1], [], []>} : vector<128x32xbf16>, vector<32x32xbf16>, vector<128x32xf32> -> vector<128x32xf32>
    %25 = arith.addf %20, %24 : vector<128x32xf32>
    %26 = tpu.concatenate %12, %25 in 1 : vector<128x32xf32>, vector<128x32xf32> -> vector<128x64xf32>
    %cst_21 = arith.constant dense<0.000000e+00> : vector<128xf32>
    %27 = vector.multi_reduction <add>, %26, %cst_21 [1] : vector<128x64xf32> to vector<128xf32>
    %28 = vector.shape_cast %27 : vector<128xf32> to vector<128x1xf32>
    %29 = arith.mulf %26, %26 : vector<128x64xf32>
    %cst_22 = arith.constant dense<0.000000e+00> : vector<128xf32>
    %30 = vector.multi_reduction <add>, %29, %cst_22 [1] : vector<128x64xf32> to vector<128xf32>
    %31 = vector.shape_cast %30 : vector<128xf32> to vector<128x1xf32>
    %cst_23 = arith.constant 1.562500e-02 : f32
    %32 = vector.broadcast %cst_23 : f32 to vector<128x1xf32>
    %33 = arith.mulf %28, %32 : vector<128x1xf32>
    %cst_24 = arith.constant 1.562500e-02 : f32
    %34 = vector.broadcast %cst_24 : f32 to vector<128x1xf32>
    %35 = arith.mulf %31, %34 : vector<128x1xf32>
    %36 = arith.mulf %33, %33 : vector<128x1xf32>
    %37 = arith.subf %35, %36 : vector<128x1xf32>
    %cst_25 = arith.constant 0.000000e+00 : f32
    %38 = vector.broadcast %cst_25 : f32 to vector<128x1xf32>
    %39 = arith.maximumf %37, %38 : vector<128x1xf32>
    %c0_26 = arith.constant 0 : index
    %c1_27 = arith.constant 1 : index
    %40 = vector.load %arg3[%c0_26, %c1_27] : memref<128x3xf32, #tpu.memory_space<vmem>>, vector<128x1xf32>
    %cst_28 = arith.constant 9.99999974E-6 : f32
    %41 = vector.broadcast %cst_28 : f32 to vector<128x1xf32>
    %42 = arith.addf %39, %41 : vector<128x1xf32>
    %43 = math.rsqrt %42 : vector<128x1xf32>
    %44 = arith.mulf %40, %43 : vector<128x1xf32>
    %45 = vector.broadcast %44 : vector<128x1xf32> to vector<128x64xf32>
    %46 = arith.mulf %26, %45 : vector<128x64xf32>
    %c0_29 = arith.constant 0 : index
    %c2 = arith.constant 2 : index
    %47 = vector.load %arg3[%c0_29, %c2] : memref<128x3xf32, #tpu.memory_space<vmem>>, vector<128x1xf32>
    %48 = arith.mulf %33, %44 : vector<128x1xf32>
    %49 = arith.subf %47, %48 : vector<128x1xf32>
    %50 = vector.broadcast %49 : vector<128x1xf32> to vector<128x64xf32>
    %51 = arith.addf %46, %50 : vector<128x64xf32>
    %cst_30 = arith.constant 0.000000e+00 : f32
    %52 = vector.broadcast %cst_30 : f32 to vector<128x64xf32>
    %53 = arith.cmpf oge, %51, %52 : vector<128x64xf32>
    %cst_31 = arith.constant 2.000000e-01 : f32
    %54 = vector.broadcast %cst_31 : f32 to vector<128x64xf32>
    %55 = arith.mulf %54, %51 : vector<128x64xf32>
    %56 = arith.select %53, %51, %55 : vector<128x64xi1>, vector<128x64xf32>
    %c0_32 = arith.constant 0 : index
    %c0_33 = arith.constant 0 : index
    %57 = vector.load %arg4[%c0_32, %c0_33] : memref<128x64xf32, #tpu.memory_space<vmem>>, vector<128x64xf32>
    tpu.vector_store %arg4[%c0_32, %c0_33], %56 {strides = array<i32>} : memref<128x64xf32, #tpu.memory_space<vmem>>, vector<128x64xf32>,
    return
  }
  func.func @transform_0(%arg0: i32) -> (i32, i32, i32) {
    %c0_i32 = arith.constant 0 : i32
    %c0_i32_0 = arith.constant 0 : i32
    %c0_i32_1 = arith.constant 0 : i32
    return %c0_i32, %arg0, %c0_i32_0 : i32, i32, i32
  }
  func.func @transform_1(%arg0: i32) -> (i32, i32, i32) {
    %c0_i32 = arith.constant 0 : i32
    %c0_i32_0 = arith.constant 0 : i32
    %c0_i32_1 = arith.constant 0 : i32
    %c0_i32_2 = arith.constant 0 : i32
    return %c0_i32, %c0_i32_0, %c0_i32_1 : i32, i32, i32
  }
  func.func @transform_2(%arg0: i32) -> (i32, i32) {
    %c0_i32 = arith.constant 0 : i32
    %c0_i32_0 = arith.constant 0 : i32
    return %arg0, %c0_i32 : i32, i32
  }
  func.func @transform_3(%arg0: i32) -> (i32, i32) {
    %c0_i32 = arith.constant 0 : i32
    %c0_i32_0 = arith.constant 0 : i32
    return %arg0, %c0_i32 : i32, i32
  }
}

</mosaic_0001>

<bundles_post_ra>
// kernel: tpu_custom_call.1
= control target key start
LH: loop header
LB: loop body
LE: loop exit
PB: predicated region body
PF: predicated region fallthrough
CT: control target
= control target key end

     0   :  { %6 = vsyncpa [#allocation3], 0  ;;  %s482_s0 = inlined_call_operand.hbm [shape: f32[8,128], index: 0, kind: input, shape index: {}]   ;;  %s483_s1 = inlined_call_operand.hbm [shape: f32[16,128], index: 1, kind: output, shape index: {}]  }
   0x1   :  { %7 = vsyncpa [#allocation4], 0 }
   0x2   :  { %9 = vsyncpa [#allocation4 + $0x1], 0  ;;  %s352_s6 = smov 0   ;;  %s354_s7 = smov 0  }
   0x3   :  { %s356_s8 = smov 0   ;;  %s358_s9 = smov 0  }
   0x4 LB: > { %s373_s10 = sadd.s32 4294967295, %s338_s9   ;;  %s184_s11 = sadd.s32 4294967294, %s338_s9   ;;  %s338_s9 = sphi %s358_s9, %s499_s9   ;;  %s334_s8 = sphi %s356_s8, %s498_s8   ;;  %s330_s7 = sphi %s354_s7, %s497_s7   ;;  %s326_s6 = sphi %s352_s6, %s496_s6  }
   0x5   : > { %s377_s12 = sadd.s32 1, %s338_s9   ;;  %s43_s13 = sadd.s32 1, %s334_s8 }
   0x6   : > { %s40_s14 = ssub.s32 %s338_s9, %s377_s12  ;;  %p53_p0 = scmp.ne.s32.totalorder %s334_s8, %s330_s7 }
   0x7   : > { %p41_p1 = scmp.eq.s32.totalorder %s40_s14, 0  ;;  %p54_p2 = scmp.eq.s32.totalorder %s373_s10, 1 }
   0x8   : > { %p59_p3 = scmp.ne.s32.totalorder %s330_s7, %s326_s6  ;;  %p60_p4 = scmp.eq.s32.totalorder %s184_s11, 1 }
   0x9   : > { %s388_s15 = scalar_select %p41_p1, %s334_s8, %s43_s13  }
   0xa   : > { %p390_p5 = por %p54_p2, %p53_p0  ;;  %p394_p6 = por %p60_p4, %p59_p3 }
   0xb   : > { %p185_p7 = scmp.ge.s32.totalorder %s338_s9, 1  ;;  %p67_p8 = scmp.lt.s32.totalorder %s338_s9, 3 }
   0xc   : > { %s487_s16 = scalar_select %p390_p5, 1, 0 }
   0xd   : > { %s488_s17 = scalar_select %p394_p6, 1, 0 }
   0xe   : > { %p484_p9 = scmp.eq.s32.totalorder %s373_s10, 0  ;;  %p401_p10 = pnand %p185_p7, %p67_p8 }
   0xf   : > { %s340_s19 = smov [#allocation2]   ;;  %s244_s24 = scalar_lea.hbm %s482_s0, 128 }
  0x10   : > { %s489_s18 = scalar_select %p401_p10, 1, 0 }
  0x11   : > { %s80_s20 = sshll.u32 %s340_s19, 4  ;;  %p200_p11 = pneg %p401_p10  ;;  %s81_s20 = int_to_ptr.vmem [resolvable:$true] %s80_s20 }
  0x12   : > { %p245_p13 = scmp.ne.s32.totalorder %s482_s0, %s244_s24  ;;  %p251_p3 = scmp.lt.u32.totalorder %s244_s24, %s482_s0 }
  0x13   : > { %p409_p12 = pnand %p484_p9, %p200_p11 }
  0x15   : > { %p246_p0 = pneg %p409_p12 }
  0x17   : > { %p247_p1 = pnand %p246_p0, %p245_p13 }
  0x19   : > { %p248_p2 = pneg %p247_p1 }
  0x1b   : > { %p253_p4 = pnand %p251_p3, %p248_p2 }
  0x1d   : > { %256 = shalt.err (!%p253_p4)
}
  0x1e   : > { %s257_s29 = scalar_lea.vmem %s81_s20, 128  ;;  %p265_p9 = scmp.lt.s32.totalorder %s81_s20, %s81_s20 }
  0x1f   : > { %p258_p7 = scmp.ne.s32.totalorder %s81_s20, %s257_s29  ;;  %p266_p6 = scmp.lt.s32.totalorder %s257_s29, %s257_s29 }
  0x21   : > { %p260_p8 = pnand %p258_p7, %p246_p0  ;;  %p267_p5 = por %p266_p6, %p265_p9 }
  0x23   : > { %p261_p11 = pneg %p260_p8 }
  0x25   : > { %p268_p10 = pnand %p267_p5, %p261_p11 }
  0x27   : > { %271 = shalt.err (!%p268_p10)
}
  0x28   : > { %203 = dma.hbm_to_vmem [thread:$0]  (!%p409_p12), %s482_s0, 128, %s81_s20, [#allocation3]  }
  0x29   : > { %p491_p13 = scmp.ne.s32.totalorder %s489_s18, 0 }
  0x2a   : > { %p492_p1 = scmp.eq.s32.totalorder (!%p491_p13), %s373_s10, 0 }
  0x2b   : > { %93 = sbr.rel (%p491_p13) target bundleno = 77 (0x4d), region = 24 }
  0x32   : > { %317 = dma.done.wait (%p492_p1), [#allocation3], 128   ;;  %p493_p0 = pmov %p492_p1 }
  0x33   : > { %s105_s3 = sand.u32 1, %s330_s7   ;;  %s191_s13 = sshll.u32 %s373_s10, 7  ;;  %v108_v0 = vld [vmem:[#allocation2] sm:$0xff] }
  0x34   : > { %319 = vsyncadd (%p493_p0), [#allocation3], 4294967168  ;;  %s189_s4 = sshll.u32 %s105_s3, 3  ;;  %v109_v1 = vadd.f32 1.0, %v108_v0  ;;  %s442_s19 = scalar_lea.hbm %s483_s1, %s191_s13 }
  0x35   : > { %s107_s5 = scalar_lea.vmem [#allocation5], %s189_s4  ;;  %s112_s20 = scalar_lea.sflag [#allocation4], %s105_s3 }
  0x36   : > { %s125_s11 = sshll.u32 %s107_s5, 4  ;;  %110 = vst [vmem:[%s107_s5] sm:$0xff] %v109_v1  ;;  %p494_p6 = scmp.ne.s32.totalorder %s487_s16, 0  ;;  %s437_s11 = int_to_ptr.vmem [resolvable:$true] %s125_s11 }
  0x37   : > { %s272_s21 = scalar_lea.vmem %s437_s11, 128  ;;  %s341_s10 = smov [#allocation5]  }
  0x38   : > { %p273_p5 = scmp.ne.s32.totalorder %s437_s11, %s272_s21  ;;  %s276_s22 = sshll.u32 %s341_s10, 4  ;;  %s277_s22 = int_to_ptr.vmem [resolvable:$false] %s276_s22 }
  0x39   : > { %s278_s23 = scalar_lea.vmem %s277_s22, 256  ;;  %p279_p12 = scmp.lt.s32.totalorder %s437_s11, %s277_s22 }
  0x3a   : > { %p274_p9 = pnand %p273_p5, %p494_p6  ;;  %p280_p2 = scmp.lt.s32.totalorder %s278_s23, %s272_s21 }
  0x3c   : > { %p275_p10 = pneg %p274_p9  ;;  %p281_p3 = por %p280_p2, %p279_p12 }
  0x3e   : > { %p282_p4 = pnand %p281_p3, %p275_p10 }
  0x40   : > { %285 = shalt.err (!%p282_p4)
}
  0x41   : > { %s286_s24 = scalar_lea.hbm %s442_s19, 128  ;;  %s290_s27 = scalar_lea.hbm %s483_s1, 256 }
  0x42   : > { %p287_p7 = scmp.ne.s32.totalorder %s442_s19, %s286_s24  ;;  %p291_p13 = scmp.lt.u32.totalorder %s442_s19, %s483_s1 }
  0x43   : > { %p292_p1 = scmp.lt.u32.totalorder %s290_s27, %s286_s24  ;;  %p294_p5 = scmp.lt.u32.totalorder %s286_s24, %s442_s19 }
  0x44   : > { %p288_p8 = pnand %p287_p7, %p494_p6 }
  0x45   : > { %p293_p0 = por %p292_p1, %p291_p13 }
  0x46   : > { %p289_p11 = pneg %p288_p8 }
  0x47   : > { %p295_p9 = por %p294_p5, %p293_p0 }
  0x49   : > { %p296_p10 = pnand %p295_p9, %p289_p11 }
  0x4b   : > { %299 = shalt.err (!%p296_p10)
}
  0x4c   : > { %198 = dma.vmem_to_hbm [thread:$0]  (%p494_p6), %s437_s11, 128, %s442_s19, %s112_s20  }
  0x4d PF: > { %p210_p12 = scmp.ge.s32.totalorder %s338_s9, 2  ;;  %s137_s30 = sand.u32 1, %s326_s6  }
  0x4e   : > { %p495_p2 = scmp.ne.s32.totalorder %s488_s17, 0  ;;  %s138_s2 = scalar_lea.sflag [#allocation4], %s137_s30 }
  0x50   : > { %p205_p3 = pnand %p210_p12, %p495_p2 }
  0x52   : > { %321 = dma.done.wait (!%p205_p3), %s138_s2, 128  }
  0x53   : > { %323 = vsyncadd (!%p205_p3), %s138_s2, 4294967168  ;;  %p12_p4 = scmp.ge.s32.totalorder %s377_s12, 4   ;;  %s496_s6 = smov %s330_s7 }
  0x54   : > { %s497_s7 = smov %s334_s8  ;;  %s498_s8 = smov %s388_s15 }
  0x55   : > { %s499_s9 = smov %s377_s12  ;;  %14 = sbr.rel (!%p12_p4) target bundleno = 4 (0x4), region = 61 }
  0x5c   :  { %143 = vsyncpa [#allocation3], 1 }
  0x5d   :  { %145 = vsyncpa [#allocation3 + $0x1], 1 }
  0x5e   :  { %146 = vsyncpa [#allocation4], 1 }
  0x5f   :  { %148 = vsyncpa [#allocation4 + $0x1], 1 }

// kernel: tpu_custom_call.1
= control target key start
LH: loop header
LB: loop body
LE: loop exit
PB: predicated region body
PF: predicated region fallthrough
CT: control target
= control target key end

     0   :  { %s1588_s16 = smov 127   ;;  %vm108_vm0 = vcmask 261120   ;;  %s1589_s24 = smov 32   ;;  %vm690_vm1 = vcmask 523264   ;;  %s2199_s1 = inlined_call_operand.vmem [shape: bf16[2,32,33], index: 1, kind: input, shape index: {}]   ;;  %s2200_s0 = inlined_call_operand.vmem [shape: bf16[2,128,32], index: 0, kind: input, shape index: {}]   ;;  %s2201_s2 = inlined_call_operand.vmem [shape: f32[128,3], index: 2, kind: input, shape index: {}]   ;;  %s2202_s3 = inlined_call_operand.vmem [shape: f32[128,64], index: 3, kind: output, shape index: {}]  }
   0x1   :  { %v1536_v0 = vld [vmem:[%s2199_s1 + $0x10] sm:$0xff]   ;;  %v1537_v1 = vld [vmem:[%s2199_s1 + $0x18] sm:$0xff]   ;;  %v1538_v2 = vld [vmem:[%s2199_s1] sm:$0xff]   ;;  %s1591_s26 = smov 1  }
   0x2   :  { %408 = vrot.lane.b32.xlu0 %v1536_v0, %s1588_s16  ;;  %v1539_v3 = vld [vmem:[%s2199_s1 + $0x8] sm:$0xff]   ;;  %102 = vrot.lane.b32.xlu1 %v1538_v2, %s1588_s16  ;;  %v1540_v4 = vld [vmem:[%s2200_s0 + $0x40] sm:$0xff]  }
   0x3   :  { %1459 = vmatprep.mubr.msk.bf16.mxu1 %vm108_vm0, %v1540_v4  ;;  %1419 = vmatprep.mubr.msk.bf16.mxu0 %vm108_vm0, %v1540_v4  ;;  %v1541_v8 = vld [vmem:[%s2200_s0 + $0x48] sm:$0xff]   ;;  %v1542_v9 = vld [vmem:[%s2200_s0 + $0x50] sm:$0xff]   ;;  %v1543_v11 = vld [vmem:[%s2200_s0 + $0x58] sm:$0xff]  }
   0x4   :  { %v1544_v12 = vld [vmem:[%s2200_s0 + $0x60] sm:$0xff]   ;;  %v1545_v13 = vld [vmem:[%s2200_s0 + $0x68] sm:$0xff]   ;;  %v1546_v14 = vld [vmem:[%s2200_s0 + $0x70] sm:$0xff]  }
   0x5   :  { %v1547_v15 = vld [vmem:[%s2200_s0 + $0x78] sm:$0xff]   ;;  %v1548_v16 = vld [vmem:[%s2200_s0] sm:$0xff]   ;;  %v1549_v17 = vld [vmem:[%s2200_s0 + $0x8] sm:$0xff]  }
   0x6   :  { %410 = vrot.lane.b32.xlu0 %v1537_v1, %s1588_s16  ;;  %104 = vrot.lane.b32.xlu1 %v1539_v3, %s1588_s16  ;;  %v1550_v18 = vld [vmem:[%s2200_s0 + $0x10] sm:$0xff]   ;;  %v1551_v19 = vld [vmem:[%s2200_s0 + $0x18] sm:$0xff]  }
   0x7   :  { %v1552_v20 = vld [vmem:[%s2200_s0 + $0x20] sm:$0xff]   ;;  %v1553_v21 = vld [vmem:[%s2200_s0 + $0x28] sm:$0xff]   ;;  %v1554_v22 = vld [vmem:[%s2200_s0 + $0x30] sm:$0xff]  }
   0x8   :  { %v1555_v23 = vld [vmem:[%s2200_s0 + $0x38] sm:$0xff]  }
  0x74   :  { %v409_v5 = vpop.permute.xlu0 %408  ;;  %v103_v6 = vpop.permute.xlu1 %102 }
  0x75   :  { %1455 = vmatprep.subr.bf16.mxu1 %v409_v5  ;;  %1415 = vmatprep.subr.bf16.mxu0 %v103_v6 }
  0x76   :  { %1456 = vmatpush3.bf16.msra.mxu1 %v409_v5  ;;  %1416 = vmatpush3.bf16.msra.mxu0 %v103_v6 }
  0x78   :  { %v411_v7 = vpop.permute.xlu0 %410  ;;  %v105_v10 = vpop.permute.xlu1 %104 }
  0x79   :  { %1457 = vmatprep.subr.bf16.mxu1 %v411_v7  ;;  %1417 = vmatprep.subr.bf16.mxu0 %v105_v10 }
  0x7a   :  { %1458 = vmatpush3.bf16.msra.mxu1 %v411_v7  ;;  %1418 = vmatpush3.bf16.msra.mxu0 %v105_v10 }
  0x7b   :  { %1475 = vmatprep.subr.bf16.mxu1 %v1536_v0  ;;  %1435 = vmatprep.subr.bf16.mxu0 %v1538_v2 }
  0x7d   :  { %1460 = vmatmul.mubr.msk.bf16.vlgmr.msra.gmra.mrb[0].mxu1 %vm108_vm0, %v1541_v8  ;;  %1420 = vmatmul.mubr.msk.bf16.vlgmr.msra.gmra.mrb[0].mxu0 %vm108_vm0, %v1541_v8 }
  0x7e   :  { %1476 = vmatpush3.bf16.msra.mxu1 %v1536_v0  ;;  %1463 = vmatprep.mubr.msk.bf16.mxu1 %vm108_vm0, %v1542_v9 }
  0x7f   :  { %1477 = vmatprep.subr.bf16.mxu1 %v1537_v1  ;;  %1423 = vmatprep.mubr.msk.bf16.mxu0 %vm108_vm0, %v1542_v9 }
  0x80   :  { %1436 = vmatpush3.bf16.msra.mxu0 %v1538_v2 }
  0x81   :  { %1437 = vmatprep.subr.bf16.mxu0 %v1539_v3 }
  0x82   :  { %1478 = vmatpush3.bf16.msra.mxu1 %v1537_v1 }
  0x84   :  { %1438 = vmatpush3.bf16.msra.mxu0 %v1539_v3 }
  0x85   :  { %1464 = vmatmul.mubr.msk.bf16.gmra.mrb[4].mxu1 %vm108_vm0, %v1543_v11  ;;  %1424 = vmatmul.mubr.msk.bf16.gmra.mrb[4].mxu0 %vm108_vm0, %v1543_v11 }
  0x86   :  { %1467 = vmatprep.mubr.msk.bf16.mxu1 %vm108_vm0, %v1544_v12  ;;  %1427 = vmatprep.mubr.msk.bf16.mxu0 %vm108_vm0, %v1544_v12 }
  0x8d   :  { %1468 = vmatmul.mubr.msk.bf16.gmra.mrb[8].mxu1 %vm108_vm0, %v1545_v13  ;;  %1428 = vmatmul.mubr.msk.bf16.gmra.mrb[8].mxu0 %vm108_vm0, %v1545_v13 }
  0x8e   :  { %1471 = vmatprep.mubr.msk.bf16.mxu1 %vm108_vm0, %v1546_v14  ;;  %1431 = vmatprep.mubr.msk.bf16.mxu0 %vm108_vm0, %v1546_v14 }
  0x95   :  { %1472 = vmatmul.mubr.msk.bf16.gmra.mrb[12].mxu1 %vm108_vm0, %v1547_v15  ;;  %1432 = vmatmul.mubr.msk.bf16.gmra.mrb[12].mxu0 %vm108_vm0, %v1547_v15 }
  0x96   :  { %1479 = vmatprep.mubr.msk.bf16.mxu1 %vm108_vm0, %v1548_v16  ;;  %1439 = vmatprep.mubr.msk.bf16.mxu0 %vm108_vm0, %v1548_v16 }
  0x9d   :  { %1480 = vmatmul.mubr.msk.bf16.vlgmr.msra.gmra.mrb[0].mxu1 %vm108_vm0, %v1549_v17  ;;  %1440 = vmatmul.mubr.msk.bf16.vlgmr.msra.gmra.mrb[0].mxu0 %vm108_vm0, %v1549_v17 }
  0x9e   :  { %1483 = vmatprep.mubr.msk.bf16.mxu1 %vm108_vm0, %v1550_v18  ;;  %1443 = vmatprep.mubr.msk.bf16.mxu0 %vm108_vm0, %v1550_v18 }
  0xa5   :  { %1484 = vmatmul.mubr.msk.bf16.gmra.mrb[4].mxu1 %vm108_vm0, %v1551_v19  ;;  %1444 = vmatmul.mubr.msk.bf16.gmra.mrb[4].mxu0 %vm108_vm0, %v1551_v19 }
  0xa6   :  { %1487 = vmatprep.mubr.msk.bf16.mxu1 %vm108_vm0, %v1552_v20  ;;  %1447 = vmatprep.mubr.msk.bf16.mxu0 %vm108_vm0, %v1552_v20 }
  0xad   :  { %1488 = vmatmul.mubr.msk.bf16.gmra.mrb[8].mxu1 %vm108_vm0, %v1553_v21  ;;  %1448 = vmatmul.mubr.msk.bf16.gmra.mrb[8].mxu0 %vm108_vm0, %v1553_v21 }
  0xae   :  { %1491 = vmatprep.mubr.msk.bf16.mxu1 %vm108_vm0, %v1554_v22  ;;  %1451 = vmatprep.mubr.msk.bf16.mxu0 %vm108_vm0, %v1554_v22 }
  0xb5   :  { %1492 = vmatmul.mubr.msk.bf16.gmra.mrb[12].mxu1 %vm108_vm0, %v1555_v23  ;;  %1452 = vmatmul.mubr.msk.bf16.gmra.mrb[12].mxu0 %vm108_vm0, %v1555_v23 }
 0x170   :  { %v1481_v24 = vpop.f32.mrb[0].mxu1  ;;  %v1441_v27 = vpop.f32.mrb[0].mxu0 }
 0x171   :  { %630 = vrot.lane.b32.xlu0 %v1481_v24, %s1589_s24  ;;  %v547_v25 = vpop.f32.mrb[1].mxu1  ;;  %v330_v29 = vpop.f32.mrb[1].mxu0 }
 0x172   :  { %v1482_v26 = vpop.f32.mrb[2].mxu1  ;;  %v1442_v30 = vpop.f32.mrb[2].mxu0 }
 0x173   :  { %632 = vrot.lane.b32.xlu1 %v1482_v26, %s1589_s24  ;;  %v550_v28 = vpop.f32.mrb[3].mxu1  ;;  %v333_v31 = vpop.f32.mrb[3].mxu0 }
 0x175   :  { %626 = vrot.lane.b32.xlu0 %v547_v25, %s1589_s24 }
 0x177   :  { %628 = vrot.lane.b32.xlu1 %v550_v28, %s1589_s24 }
 0x178   :  { %v1485_v32 = vpop.f32.mrb[4].mxu1  ;;  %v1445_v35 = vpop.f32.mrb[4].mxu0 }
 0x179   :  { %638 = vrot.lane.b32.xlu0 %v1485_v32, %s1589_s24  ;;  %v563_v33 = vpop.f32.mrb[5].mxu1  ;;  %v346_v37 = vpop.f32.mrb[5].mxu0 }
 0x17a   :  { %v1486_v34 = vpop.f32.mrb[6].mxu1  ;;  %v1711_v38 = vpop.f32.mrb[6].mxu0 }
 0x17b   :  { %640 = vrot.lane.b32.xlu1 %v1486_v34, %s1589_s24  ;;  %v566_v36 = vpop.f32.mrb[7].mxu1  ;;  %v1714_v39 = vpop.f32.mrb[7].mxu0 }
 0x17d   :  { %634 = vrot.lane.b32.xlu0 %v563_v33, %s1589_s24 }
 0x17f   :  { %636 = vrot.lane.b32.xlu1 %v566_v36, %s1589_s24 }
 0x180   :  { %v1489_v40 = vpop.f32.mrb[8].mxu1  ;;  %v1718_v43 = vpop.f32.mrb[8].mxu0 }
 0x181   :  { %646 = vrot.lane.b32.xlu0 %v1489_v40, %s1589_s24  ;;  %v579_v41 = vpop.f32.mrb[9].mxu1  ;;  %v1721_v45 = vpop.f32.mrb[9].mxu0 }
 0x182   :  { %v1490_v42 = vpop.f32.mrb[10].mxu1  ;;  %v1723_v46 = vpop.f32.mrb[10].mxu0 }
 0x183   :  { %648 = vrot.lane.b32.xlu1 %v1490_v42, %s1589_s24  ;;  %v582_v44 = vpop.f32.mrb[11].mxu1  ;;  %v1726_v47 = vpop.f32.mrb[11].mxu0 }
 0x185   :  { %642 = vrot.lane.b32.xlu0 %v579_v41, %s1589_s24 }
 0x187   :  { %644 = vrot.lane.b32.xlu1 %v582_v44, %s1589_s24  ;;  %v1590_v44 = vmov 1  }
 0x188   :  { %v1493_v48 = vpop.f32.mrb[12].mxu1  ;;  %v1730_v51 = vpop.f32.mrb[12].mxu0  ;;  %1532 = vset.pattern.permute.xlu1 %v1590_v44  ;;  %1533 = vset.pattern.permute.xlu0 %v1590_v44 }
 0x189   :  { %654 = vrot.lane.b32.xlu0 %v1493_v48, %s1589_s24  ;;  %v595_v49 = vpop.f32.mrb[13].mxu1  ;;  %v1733_v53 = vpop.f32.mrb[13].mxu0 }
 0x18a   :  { %v1494_v50 = vpop.f32.mrb[14].mxu1  ;;  %v1735_v54 = vpop.f32.mrb[14].mxu0 }
 0x18b   :  { %656 = vrot.lane.b32.xlu1 %v1494_v50, %s1589_s24  ;;  %v598_v52 = vpop.f32.mrb[15].mxu1  ;;  %v1738_v55 = vpop.f32.mrb[15].mxu0 }
 0x18d   :  { %650 = vrot.lane.b32.xlu0 %v595_v49, %s1589_s24 }
 0x18f   :  { %652 = vrot.lane.b32.xlu1 %v598_v52, %s1589_s24 }
 0x1e3   :  { %v631_v56 = vpop.permute.xlu0 %630 }
 0x1e4   :  { %v1742_v57 = vsel %vm108_vm0, %v1441_v27, %v631_v56 }
 0x1e5   :  { %v633_v58 = vpop.permute.xlu1 %632  ;;  %v697_v59 = vsel %vm690_vm1, %v1742_v57, 0.0  ;;  %v741_v60 = vmul.f32 %v1742_v57, %v1742_v57 }
 0x1e6   :  { %698 = vadd.xlane.f32.xlu0 %v697_v59  ;;  %v1755_v2 = vsel %vm108_vm0, %v1442_v30, %v633_v58 }
 0x1e7   :  { %v627_v61 = vpop.permute.xlu0 %626  ;;  %v761_v62 = vsel %vm690_vm1, %v741_v60, 0.0  ;;  %v700_v7 = vsel %vm690_vm1, %v1755_v2, 0.0  ;;  %v742_v8 = vmul.f32 %v1755_v2, %v1755_v2 }
 0x1e8   :  { %v1750_v63 = vsel %vm108_vm0, %v330_v29, %v627_v61  ;;  %762 = vadd.xlane.f32.xlu1 %v761_v62 }
 0x1e9   :  { %v629_v0 = vpop.permute.xlu1 %628  ;;  %v691_v1 = vsel %vm690_vm1, %v1750_v63, 0.0  ;;  %v739_v6 = vmul.f32 %v1750_v63, %v1750_v63  ;;  %v764_v13 = vsel %vm690_vm1, %v742_v8, 0.0 }
 0x1ea   :  { %v1758_v3 = vsel %vm108_vm0, %v333_v31, %v629_v0  ;;  %692 = vadd.xlane.f32.xlu0 %v691_v1 }
 0x1eb   :  { %v639_v4 = vpop.permute.xlu0 %638  ;;  %v694_v5 = vsel %vm690_vm1, %v1758_v3, 0.0  ;;  %v755_v9 = vsel %vm690_vm1, %v739_v6, 0.0  ;;  %v740_v14 = vmul.f32 %v1758_v3, %v1758_v3 }
 0x1ec   :  { %695 = vadd.xlane.f32.xlu1 %v694_v5  ;;  %v1770_v10 = vsel %vm108_vm0, %v1445_v35, %v639_v4 }
 0x1ed   :  { %v641_v11 = vpop.permute.xlu1 %640  ;;  %v709_v15 = vsel %vm690_vm1, %v1770_v10, 0.0  ;;  %v758_v17 = vsel %vm690_vm1, %v740_v14, 0.0  ;;  %v745_v21 = vmul.f32 %v1770_v10, %v1770_v10 }
 0x1ee   :  { %701 = vadd.xlane.f32.xlu0 %v700_v7  ;;  %v1783_v18 = vsel %vm108_vm0, %v1711_v38, %v641_v11 }
 0x1ef   :  { %v635_v12 = vpop.permute.xlu0 %634  ;;  %v712_v22 = vsel %vm690_vm1, %v1783_v18, 0.0  ;;  %v773_v25 = vsel %vm690_vm1, %v745_v21, 0.0  ;;  %v746_v28 = vmul.f32 %v1783_v18, %v1783_v18 }
 0x1f0   :  { %756 = vadd.xlane.f32.xlu1 %v755_v9  ;;  %v1778_v16 = vsel %vm108_vm0, %v346_v37, %v635_v12 }
 0x1f1   :  { %v637_v19 = vpop.permute.xlu1 %636  ;;  %v703_v20 = vsel %vm690_vm1, %v1778_v16, 0.0  ;;  %v743_v26 = vmul.f32 %v1778_v16, %v1778_v16  ;;  %v776_v33 = vsel %vm690_vm1, %v746_v28, 0.0 }
 0x1f2   :  { %765 = vadd.xlane.f32.xlu0 %v764_v13  ;;  %v1793_v23 = vsel %vm108_vm0, %v1714_v39, %v637_v19 }
 0x1f3   :  { %v647_v24 = vpop.permute.xlu0 %646  ;;  %v706_v27 = vsel %vm690_vm1, %v1793_v23, 0.0  ;;  %v767_v29 = vsel %vm690_vm1, %v743_v26, 0.0  ;;  %v744_v34 = vmul.f32 %v1793_v23, %v1793_v23 }
 0x1f4   :  { %710 = vadd.xlane.f32.xlu1 %v709_v15  ;;  %v1805_v30 = vsel %vm108_vm0, %v1718_v43, %v647_v24 }
 0x1f5   :  { %v649_v31 = vpop.permute.xlu1 %648  ;;  %v721_v35 = vsel %vm690_vm1, %v1805_v30, 0.0  ;;  %v770_v37 = vsel %vm690_vm1, %v744_v34, 0.0  ;;  %v749_v41 = vmul.f32 %v1805_v30, %v1805_v30 }
 0x1f6   :  { %759 = vadd.xlane.f32.xlu0 %v758_v17  ;;  %v1819_v38 = vsel %vm108_vm0, %v1723_v46, %v649_v31 }
 0x1f7   :  { %v643_v32 = vpop.permute.xlu0 %642  ;;  %v724_v42 = vsel %vm690_vm1, %v1819_v38, 0.0  ;;  %v785_v46 = vsel %vm690_vm1, %v749_v41, 0.0  ;;  %v750_v50 = vmul.f32 %v1819_v38, %v1819_v38 }
 0x1f8   :  { %704 = vadd.xlane.f32.xlu1 %v703_v20  ;;  %v1814_v36 = vsel %vm108_vm0, %v1721_v45, %v643_v32 }
 0x1f9   :  { %v645_v39 = vpop.permute.xlu1 %644  ;;  %v715_v40 = vsel %vm690_vm1, %v1814_v36, 0.0  ;;  %v747_v48 = vmul.f32 %v1814_v36, %v1814_v36  ;;  %v788_v59 = vsel %vm690_vm1, %v750_v50, 0.0 }
 0x1fa   :  { %713 = vadd.xlane.f32.xlu0 %v712_v22  ;;  %v1829_v43 = vsel %vm108_vm0, %v1726_v47, %v645_v39 }
 0x1fb   :  { %v655_v45 = vpop.permute.xlu0 %654  ;;  %v718_v49 = vsel %vm690_vm1, %v1829_v43, 0.0  ;;  %v779_v47 = vsel %vm690_vm1, %v747_v48, 0.0  ;;  %v748_v60 = vmul.f32 %v1829_v43, %v1829_v43 }
 0x1fc   :  { %774 = vadd.xlane.f32.xlu1 %v773_v25  ;;  %v1841_v52 = vsel %vm108_vm0, %v1730_v51, %v655_v45 }
 0x1fd   :  { %v657_v56 = vpop.permute.xlu1 %656  ;;  %v733_v61 = vsel %vm690_vm1, %v1841_v52, 0.0  ;;  %v782_v51 = vsel %vm690_vm1, %v748_v60, 0.0  ;;  %v753_v5 = vmul.f32 %v1841_v52, %v1841_v52  ;;  %v1896_v60 = vld [vmem:[%s2201_s2 + $0x10] sm:$0xff] }
 0x1fe   :  { %707 = vadd.xlane.f32.xlu0 %v706_v27  ;;  %v1855_v0 = vsel %vm108_vm0, %v1735_v54, %v657_v56 }
 0x1ff   :  { %v651_v58 = vpop.permute.xlu0 %650  ;;  %v797_v54 = vsel %vm690_vm1, %v753_v5, 0.0  ;;  %v754_v12 = vmul.f32 %v1855_v0, %v1855_v0 }
 0x200   :  { %768 = vadd.xlane.f32.xlu1 %v767_v29  ;;  %v1850_v62 = vsel %vm108_vm0, %v1733_v53, %v651_v58  ;;  %v736_v53 = vsel %vm690_vm1, %v1855_v0, 0.0 }
 0x201   :  { %v653_v1 = vpop.permute.xlu1 %652  ;;  %v727_v4 = vsel %vm690_vm1, %v1850_v62, 0.0  ;;  %v751_v7 = vmul.f32 %v1850_v62, %v1850_v62  ;;  %v800_v13 = vsel %vm690_vm1, %v754_v12, 0.0 }
 0x202   :  { %777 = vadd.xlane.f32.xlu0 %v776_v33  ;;  %v1865_v6 = vsel %vm108_vm0, %v1738_v55, %v653_v1 }
 0x203   :  { %v730_v8 = vsel %vm690_vm1, %v1865_v6, 0.0  ;;  %v752_v9 = vmul.f32 %v1865_v6, %v1865_v6  ;;  %v791_v11 = vsel %vm690_vm1, %v751_v7, 0.0 }
 0x204   :  { %722 = vadd.xlane.f32.xlu1 %v721_v35 }
 0x205   :  { %v794_v55 = vsel %vm690_vm1, %v752_v9, 0.0 }
 0x206   :  { %771 = vadd.xlane.f32.xlu0 %v770_v37 }
 0x208   :  { %716 = vadd.xlane.f32.xlu1 %v715_v40 }
 0x20a   :  { %725 = vadd.xlane.f32.xlu0 %v724_v42 }
 0x20c   :  { %786 = vadd.xlane.f32.xlu1 %v785_v46 }
 0x20e   :  { %719 = vadd.xlane.f32.xlu0 %v718_v49 }
 0x210   :  { %780 = vadd.xlane.f32.xlu1 %v779_v47 }
 0x212   :  { %789 = vadd.xlane.f32.xlu0 %v788_v59 }
 0x214   :  { %734 = vadd.xlane.f32.xlu1 %v733_v61 }
 0x216   :  { %783 = vadd.xlane.f32.xlu0 %v782_v51 }
 0x218   :  { %728 = vadd.xlane.f32.xlu1 %v727_v4 }
 0x21a   :  { %737 = vadd.xlane.f32.xlu0 %v736_v53 }
 0x21c   :  { %798 = vadd.xlane.f32.xlu1 %v797_v54 }
 0x21e   :  { %731 = vadd.xlane.f32.xlu0 %v730_v8 }
 0x220   :  { %792 = vadd.xlane.f32.xlu1 %v791_v11 }
 0x222   :  { %795 = vadd.xlane.f32.xlu0 %v794_v55 }
 0x226   :  { %801 = vadd.xlane.f32.xlu0 %v800_v13 }
 0x273   :  { %v699_v14 = vpop.xlane.xlu0 %698 }
 0x274   :  { %v805_v15 = vmul.f32 0.015625, %v699_v14 }
 0x275   :  { %v763_v17 = vpop.xlane.xlu1 %762 }
 0x276   :  { %v837_v19 = vmul.f32 %v805_v15, %v805_v15  ;;  %v821_v20 = vmul.f32 0.015625, %v763_v17 }
 0x277   :  { %v693_v21 = vpop.xlane.xlu0 %692 }
 0x278   :  { %v853_v22 = vsub.f32 %v821_v20, %v837_v19  ;;  %v1879_v26 = vmul.f32 0.015625, %v693_v21  ;;  %v1911_v20 = vld [vmem:[%s2201_s2] sm:$0xff] }
 0x279   :  { %v696_v24 = vpop.xlane.xlu1 %695 }
 0x27a   :  { %v869_v25 = vmax.f32 %v853_v22, 0.0  ;;  %v835_v32 = vmul.f32 %v1879_v26, %v1879_v26  ;;  %v1885_v35 = vmul.f32 0.015625, %v696_v24 }
 0x27b   :  { %v702_v27 = vpop.xlane.xlu0 %701 }
 0x27c   :  { %v901_v28 = vadd.f32 1e-05, %v869_v25  ;;  %v1881_v29 = vmul.f32 0.015625, %v702_v27  ;;  %v836_v46 = vmul.f32 %v1885_v35, %v1885_v35 }
 0x27d   :  { %v757_v31 = vpop.xlane.xlu1 %756 }
 0x27e   :  { %1556 = vrsqrt.f32 %v901_v28  ;;  %v819_v33 = vmul.f32 0.015625, %v757_v31  ;;  %v838_v37 = vmul.f32 %v1881_v29, %v1881_v29 }
 0x27f   :  { %v766_v34 = vpop.xlane.xlu0 %765 }
 0x280   :  { %v851_v39 = vsub.f32 %v819_v33, %v835_v32  ;;  %v822_v40 = vmul.f32 0.015625, %v766_v34 }
 0x281   :  { %v711_v41 = vpop.xlane.xlu1 %710 }
 0x282   :  { %v867_v42 = vmax.f32 %v851_v39, 0.0  ;;  %v854_v44 = vsub.f32 %v822_v40, %v838_v37  ;;  %v1891_v58 = vmul.f32 0.015625, %v711_v41  ;;  %v1921_v37 = vld [vmem:[%s2201_s2 + $0x18] sm:$0xff] }
 0x283   :  { %v760_v45 = vpop.xlane.xlu0 %759 }
 0x284   :  { %v899_v48 = vadd.f32 1e-05, %v867_v42  ;;  %v870_v49 = vmax.f32 %v854_v44, 0.0  ;;  %v820_v50 = vmul.f32 0.015625, %v760_v45  ;;  %v841_v53 = vmul.f32 %v1891_v58, %v1891_v58  ;;  %v1926_v44 = vld [vmem:[%s2201_s2 + $0x8] sm:$0xff] }
 0x285   :  { %v705_v47 = vpop.xlane.xlu1 %704 }
 0x286   :  { %1558 = vrsqrt.f32 %v899_v48  ;;  %v902_v56 = vadd.f32 1e-05, %v870_v49  ;;  %v852_v59 = vsub.f32 %v820_v50, %v836_v46  ;;  %v1901_v7 = vmul.f32 0.015625, %v705_v47 }
 0x287   :  { %v714_v61 = vpop.xlane.xlu0 %713 }
 0x288   :  { %v1557_v51 = vpop.eup %1556  ;;  %1560 = vrsqrt.f32 %v902_v56  ;;  %v868_v1 = vmax.f32 %v852_v59, 0.0  ;;  %v1903_v12 = vmul.f32 0.015625, %v714_v61  ;;  %v839_v14 = vmul.f32 %v1901_v7, %v1901_v7 }
 0x289   :  { %v775_v4 = vpop.xlane.xlu1 %774  ;;  %v933_v5 = vmul.f32 %v1557_v51, %v1896_v60 }
 0x28a   :  { %v900_v54 = vadd.f32 1e-05, %v868_v1  ;;  %v825_v8 = vmul.f32 0.015625, %v775_v4  ;;  %v842_v27 = vmul.f32 %v1903_v12, %v1903_v12 }
 0x28b   :  { %v708_v9 = vpop.xlane.xlu0 %707  ;;  %959 = vperm.xlu1 %1532, %v933_v5   ;;  %v1045_v11 = vmul.f32 %v933_v5, %v805_v15 }
 0x28c   :  { %1562 = vrsqrt.f32 %v900_v54  ;;  %v857_v55 = vsub.f32 %v825_v8, %v841_v53  ;;  %v1915_v28 = vmul.f32 0.015625, %v708_v9  ;;  %v1942_v54 = vld [vmem:[%s2201_s2 + $0x30] sm:$0xff] }
 0x28d   :  { %v769_v13 = vpop.xlane.xlu1 %768  ;;  %1079 = vrot.lane.b32.xlu0 %v1045_v11, %s1591_s26 }
 0x28e   :  { %v873_v17 = vmax.f32 %v857_v55, 0.0  ;;  %v823_v19 = vmul.f32 0.015625, %v769_v13  ;;  %v840_v45 = vmul.f32 %v1915_v28, %v1915_v28 }
 0x28f   :  { %v778_v21 = vpop.xlane.xlu0 %777 }
 0x290   :  { %v1559_v15 = vpop.eup %1558  ;;  %v905_v22 = vadd.f32 1e-05, %v873_v17  ;;  %v855_v24 = vsub.f32 %v823_v19, %v839_v14  ;;  %v826_v25 = vmul.f32 0.015625, %v778_v21 }
 0x291   :  { %v723_v31 = vpop.xlane.xlu1 %722  ;;  %v931_v32 = vmul.f32 %v1559_v15, %v1911_v20 }
 0x292   :  { %v1561_v33 = vpop.eup %1560  ;;  %1564 = vrsqrt.f32 %v905_v22  ;;  %v871_v34 = vmax.f32 %v855_v24, 0.0  ;;  %v858_v39 = vsub.f32 %v826_v25, %v842_v27  ;;  %v1931_v50 = vmul.f32 0.015625, %v723_v31  ;;  %v1954_v24 = vld [vmem:[%s2201_s2 + $0x20] sm:$0xff] }
 0x293   :  { %v772_v40 = vpop.xlane.xlu0 %771  ;;  %949 = vperm.xlu1 %1532, %v931_v32   ;;  %v934_v48 = vmul.f32 %v1561_v33, %v1921_v37  ;;  %v1043_v1 = vmul.f32 %v931_v32, %v1879_v26 }
 0x294   :  { %v903_v41 = vadd.f32 1e-05, %v871_v34  ;;  %v824_v42 = vmul.f32 0.015625, %v772_v40  ;;  %v874_v47 = vmax.f32 %v858_v39, 0.0  ;;  %v845_v4 = vmul.f32 %v1931_v50, %v1931_v50 }
 0x295   :  { %v717_v46 = vpop.xlane.xlu1 %716  ;;  %v1046_v17 = vmul.f32 %v934_v48, %v1881_v29 }
 0x296   :  { %v1563_v49 = vpop.eup %1562  ;;  %1566 = vrsqrt.f32 %v903_v41  ;;  %v856_v56 = vsub.f32 %v824_v42, %v840_v45  ;;  %v1937_v5 = vmul.f32 0.015625, %v717_v46  ;;  %v906_v8 = vadd.f32 1e-05, %v874_v47 }
 0x297   :  { %v726_v59 = vpop.xlane.xlu0 %725  ;;  %964 = vperm.xlu1 %1532, %v934_v48   ;;  %v932_v61 = vmul.f32 %v1563_v49, %v1926_v44 }
 0x298   :  { %v872_v9 = vmax.f32 %v856_v56, 0.0  ;;  %v1944_v11 = vmul.f32 0.015625, %v726_v59  ;;  %v843_v21 = vmul.f32 %v1937_v5, %v1937_v5  ;;  %1568 = vrsqrt.f32 %v906_v8 }
 0x299   :  { %v787_v51 = vpop.xlane.xlu1 %786  ;;  %954 = vperm.xlu0 %1533, %v932_v61   ;;  %v1044_v42 = vmul.f32 %v932_v61, %v1885_v35 }
 0x29a   :  { %v829_v53 = vmul.f32 0.015625, %v787_v51  ;;  %v904_v25 = vadd.f32 1e-05, %v872_v9  ;;  %v846_v27 = vmul.f32 %v1944_v11, %v1944_v11 }
 0x29b   :  { %v720_v55 = vpop.xlane.xlu0 %719  ;;  %1075 = vrot.lane.b32.xlu1 %v1043_v1, %s1591_s26 }
 0x29c   :  { %v1565_v13 = vpop.eup %1564  ;;  %v861_v26 = vsub.f32 %v829_v53, %v845_v4  ;;  %v1960_v34 = vmul.f32 0.015625, %v720_v55 }
 0x29d   :  { %v781_v14 = vpop.xlane.xlu1 %780  ;;  %v937_v19 = vmul.f32 %v1565_v13, %v1942_v54 }
 0x29e   :  { %v877_v15 = vmax.f32 %v861_v26, 0.0  ;;  %v827_v22 = vmul.f32 0.015625, %v781_v14  ;;  %v844_v47 = vmul.f32 %v1960_v34, %v1960_v34  ;;  %v1979_v14 = vld [vmem:[%s2201_s2 + $0x38] sm:$0xff] }
 0x29f   :  { %v790_v31 = vpop.xlane.xlu0 %789  ;;  %1081 = vrot.lane.b32.xlu1 %v1046_v17, %s1591_s26  ;;  %v1049_v29 = vmul.f32 %v937_v19, %v1891_v58  ;;  %v1984_v17 = vld [vmem:[%s2201_s2 + $0x50] sm:$0xff] }
 0x2a0   :  { %v1567_v32 = vpop.eup %1566  ;;  %v909_v33 = vadd.f32 1e-05, %v877_v15  ;;  %v859_v39 = vsub.f32 %v827_v22, %v843_v21  ;;  %v830_v40 = vmul.f32 0.015625, %v790_v31 }
 0x2a1   :  { %v735_v41 = vpop.xlane.xlu1 %734  ;;  %1087 = vrot.lane.b32.xlu0 %v1049_v29, %s1591_s26  ;;  %v935_v45 = vmul.f32 %v1567_v32, %v1954_v24 }
 0x2a2   :  { %1570 = vrsqrt.f32 %v909_v33  ;;  %v875_v46 = vmax.f32 %v859_v39, 0.0  ;;  %v862_v48 = vsub.f32 %v830_v40, %v846_v27  ;;  %v1970_v35 = vmul.f32 0.015625, %v735_v41  ;;  %v1569_v9 = vpop.eup %1568  ;;  %v1997_v41 = vld [vmem:[%s2201_s2 + $0x28] sm:$0xff] }
 0x2a3   :  { %1572 = vrsqrt.f32 %v904_v25  ;;  %v784_v49 = vpop.xlane.xlu0 %783  ;;  %1077 = vrot.lane.b32.xlu1 %v1044_v42, %s1591_s26  ;;  %v1047_v58 = vmul.f32 %v935_v45, %v1901_v7  ;;  %v938_v29 = vmul.f32 %v1569_v9, %v1979_v14  ;;  %v2002_v42 = vld [vmem:[%s2201_s2 + $0x40] sm:$0xff] }
 0x2a4   :  { %v907_v56 = vadd.f32 1e-05, %v875_v46  ;;  %v878_v59 = vmax.f32 %v862_v48, 0.0  ;;  %v828_v51 = vmul.f32 0.015625, %v784_v49  ;;  %v849_v7 = vmul.f32 %v1970_v35, %v1970_v35 }
 0x2a5   :  { %v729_v1 = vpop.xlane.xlu1 %728  ;;  %1083 = vrot.lane.b32.xlu0 %v1047_v58, %s1591_s26 }
 0x2a6   :  { %1574 = vrsqrt.f32 %v907_v56  ;;  %v860_v61 = vsub.f32 %v828_v51, %v844_v47  ;;  %v910_v53 = vadd.f32 1e-05, %v878_v59  ;;  %v1974_v13 = vmul.f32 0.015625, %v729_v1 }
 0x2a7   :  { %979 = vperm.xlu1 %1532, %v937_v19   ;;  %v738_v4 = vpop.xlane.xlu0 %737 }
 0x2a8   :  { %v876_v8 = vmax.f32 %v860_v61, 0.0  ;;  %1576 = vrsqrt.f32 %v910_v53  ;;  %v847_v33 = vmul.f32 %v1974_v13, %v1974_v13 }
 0x2a9   :  { %v799_v55 = vpop.xlane.xlu1 %798 }
 0x2aa   :  { %v833_v26 = vmul.f32 0.015625, %v799_v55  ;;  %v908_v15 = vadd.f32 1e-05, %v876_v8 }
 0x2ab   :  { %969 = vperm.xlu1 %1532, %v935_v45   ;;  %v732_v19 = vpop.xlane.xlu0 %731  ;;  %v2004_v45 = vmul.f32 0.015625, %v738_v4 }
 0x2ac   :  { %v1571_v21 = vpop.eup %1570  ;;  %v865_v22 = vsub.f32 %v833_v26, %v849_v7  ;;  %v1986_v25 = vmul.f32 0.015625, %v732_v19  ;;  %1578 = vrsqrt.f32 %v908_v15  ;;  %v1050_v26 = vmul.f32 %v938_v29, %v1903_v12  ;;  %v2029_v12 = vld [vmem:[%s2201_s2 + $0x48] sm:$0xff] }
 0x2ad   :  { %v1573_v27 = vpop.eup %1572  ;;  %v793_v31 = vpop.xlane.xlu1 %792  ;;  %v1990_v32 = vmul.f32 %v1571_v21, %v1984_v17  ;;  %v850_v8 = vmul.f32 %v2004_v45, %v2004_v45 }
 0x2ae   :  { %v881_v39 = vmax.f32 %v865_v22, 0.0  ;;  %v831_v40 = vmul.f32 0.015625, %v793_v31  ;;  %v848_v58 = vmul.f32 %v1986_v25, %v1986_v25  ;;  %v936_v51 = vmul.f32 %v1573_v27, %v1997_v41  ;;  %v2021_v22 = vld [vmem:[%s2201_s2 + $0x58] sm:$0xff] }
 0x2af   :  { %984 = vperm.xlu1 %1532, %v938_v29   ;;  %v796_v46 = vpop.xlane.xlu0 %795  ;;  %v1053_v48 = vmul.f32 %v1990_v32, %v1931_v50 }
 0x2b0   :  { %v1575_v49 = vpop.eup %1574  ;;  %v863_v47 = vsub.f32 %v831_v40, %v847_v33  ;;  %v832_v56 = vmul.f32 0.015625, %v796_v46  ;;  %v913_v59 = vadd.f32 1e-05, %v881_v39  ;;  %v1048_v27 = vmul.f32 %v936_v51, %v1915_v28  ;;  %v2037_v28 = vld [vmem:[%s2201_s2 + $0x60] sm:$0xff] }
 0x2b1   :  { %1095 = vrot.lane.b32.xlu0 %v1053_v48, %s1591_s26  ;;  %v939_v1 = vmul.f32 %v1575_v49, %v2002_v42  ;;  %v2043_v49 = vld [vmem:[%s2201_s2 + $0x68] sm:$0xff] }
 0x2b2   :  { %v879_v61 = vmax.f32 %v863_v47, 0.0  ;;  %v864_v4 = vsub.f32 %v832_v56, %v848_v58  ;;  %1580 = vrsqrt.f32 %v913_v59  ;;  %v1577_v19 = vpop.eup %1576 }
 0x2b3   :  { %974 = vperm.xlu1 %1532, %v936_v51   ;;  %v802_v53 = vpop.xlane.xlu0 %801  ;;  %v1051_v50 = vmul.f32 %v939_v1, %v1937_v5  ;;  %v942_v31 = vmul.f32 %v1577_v19, %v2021_v22 }
 0x2b4   :  { %v911_v9 = vadd.f32 1e-05, %v879_v61  ;;  %v880_v55 = vmax.f32 %v864_v4, 0.0  ;;  %v834_v7 = vmul.f32 0.015625, %v802_v53  ;;  %v2059_v4 = vld [vmem:[%s2201_s2 + $0x78] sm:$0xff] }
 0x2b5   :  { %1091 = vrot.lane.b32.xlu0 %v1051_v50, %s1591_s26  ;;  %v1054_v29 = vmul.f32 %v942_v31, %v1944_v11  ;;  %v2048_v11 = vld [vmem:[%s2201_s2 + $0x70] sm:$0xff] }
 0x2b6   :  { %1582 = vrsqrt.f32 %v911_v9  ;;  %v912_v21 = vadd.f32 1e-05, %v880_v55  ;;  %v866_v15 = vsub.f32 %v834_v7, %v850_v8  ;;  %v1579_v33 = vpop.eup %1578 }
 0x2b7   :  { %1089 = vrot.lane.b32.xlu1 %v1050_v26, %s1591_s26  ;;  %v940_v40 = vmul.f32 %v1579_v33, %v2029_v12 }
 0x2b8   :  { %1584 = vrsqrt.f32 %v912_v21  ;;  %v882_v5 = vmax.f32 %v866_v15, 0.0 }
 0x2b9   :  { %v1052_v58 = vmul.f32 %v940_v40, %v1960_v34 }
 0x2ba   :  { %v914_v39 = vadd.f32 1e-05, %v882_v5 }
 0x2bb   :  { %1085 = vrot.lane.b32.xlu1 %v1048_v27, %s1591_s26 }
 0x2bc   :  { %1586 = vrsqrt.f32 %v914_v39  ;;  %v1581_v46 = vpop.eup %1580 }
 0x2bd   :  { %v945_v61 = vmul.f32 %v1581_v46, %v2048_v11 }
 0x2bf   :  { %1097 = vrot.lane.b32.xlu1 %v1054_v29, %s1591_s26  ;;  %v1057_v50 = vmul.f32 %v945_v61, %v1970_v35 }
 0x2c0   :  { %v1583_v48 = vpop.eup %1582 }
 0x2c1   :  { %v943_v47 = vmul.f32 %v1583_v48, %v2037_v28 }
 0x2c2   :  { %v1585_v56 = vpop.eup %1584 }
 0x2c3   :  { %1093 = vrot.lane.b32.xlu1 %v1052_v58, %s1591_s26  ;;  %v1055_v59 = vmul.f32 %v943_v47, %v1974_v13  ;;  %v944_v51 = vmul.f32 %v1585_v56, %v2043_v49 }
 0x2c5   :  { %1099 = vrot.lane.b32.xlu0 %v1055_v59, %s1591_s26  ;;  %v1056_v34 = vmul.f32 %v944_v51, %v1986_v25  ;;  %v1592_v25 = vmov 2  }
 0x2c6   :  { %v1587_v53 = vpop.eup %1586 }
 0x2c7   :  { %1101 = vrot.lane.b32.xlu1 %v1056_v34, %s1591_s26  ;;  %v946_v13 = vmul.f32 %v1587_v53, %v2059_v4 }
 0x2c9   :  { %1103 = vrot.lane.b32.xlu0 %v1057_v50, %s1591_s26  ;;  %v1058_v8 = vmul.f32 %v946_v13, %v2004_v45 }
 0x2cb   :  { %1105 = vrot.lane.b32.xlu1 %v1058_v8, %s1591_s26 }
 0x2cd   :  { %989 = vperm.xlu0 %1533, %v939_v1  }
 0x2cf   :  { %994 = vperm.xlu1 %1532, %v940_v40  }
 0x2d1   :  { %999 = vperm.xlu0 %1533, %v1990_v32  }
 0x2d3   :  { %1004 = vperm.xlu1 %1532, %v942_v31  }
 0x2d5   :  { %1009 = vperm.xlu0 %1533, %v943_v47  }
 0x2d7   :  { %1014 = vperm.xlu1 %1532, %v944_v51  }
 0x2d9   :  { %1019 = vperm.xlu0 %1533, %v945_v61  }
 0x2db   :  { %1024 = vperm.xlu1 %1532, %v946_v13  }
 0x2dd   :  { %1535 = vset.pattern.permute.xlu0 %v1592_v25 }
 0x2df   :  { %1534 = vset.pattern.permute.xlu1 %v1592_v25 }
 0x2ff   :  { %v1080_v35 = vpop.permute.xlu0 %1079 }
 0x300   :  { %v1125_v9 = vsub.f32 %v1896_v60, %v1080_v35 }
 0x302   :  { %1151 = vperm.xlu1 %1534, %v1125_v9  }
 0x30a   :  { %v960_v55 = vpop.permute.xlu1 %959 }
 0x30b   :  { %v1029_v25 = vmul.f32 %v960_v55, %v1742_v57 }
 0x312   :  { %v2071_v45 = vpop.permute.xlu1 %949 }
 0x316   :  { %v2073_v7 = vpop.permute.xlu1 %964 }
 0x317   :  { %v1030_v57 = vmul.f32 %v2073_v7, %v1755_v2 }
 0x318   :  { %v2075_v1 = vpop.permute.xlu0 %954 }
 0x31a   :  { %v1076_v32 = vpop.permute.xlu1 %1075 }
 0x31b   :  { %v1123_v26 = vsub.f32 %v1911_v20, %v1076_v32 }
 0x31c   :  { %v1088_v19 = vpop.permute.xlu0 %1087 }
 0x31d   :  { %1141 = vperm.xlu0 %1535, %v1123_v26   ;;  %v1129_v33 = vsub.f32 %v1942_v54, %v1088_v19 }
 0x31e   :  { %v1082_v21 = vpop.permute.xlu1 %1081 }
 0x31f   :  { %v1126_v15 = vsub.f32 %v1921_v37, %v1082_v21  ;;  %v1027_v21 = vmul.f32 %v2071_v45, %v1750_v63 }
 0x320   :  { %v1084_v27 = vpop.permute.xlu0 %1083 }
 0x321   :  { %1156 = vperm.xlu0 %1535, %v1126_v15   ;;  %v1127_v20 = vsub.f32 %v1954_v24, %v1084_v27 }
 0x322   :  { %v1078_v5 = vpop.permute.xlu1 %1077 }
 0x323   :  { %v1124_v60 = vsub.f32 %v1926_v44, %v1078_v5 }
 0x324   :  { %v1096_v39 = vpop.permute.xlu0 %1095 }
 0x325   :  { %1146 = vperm.xlu1 %1534, %v1124_v60   ;;  %v1133_v37 = vsub.f32 %v1984_v17, %v1096_v39  ;;  %v1028_v39 = vmul.f32 %v2075_v1, %v1758_v3 }
 0x326   :  { %v2080_v31 = vpop.permute.xlu1 %979 }
 0x327   :  { %v1033_v2 = vmul.f32 %v2080_v31, %v1770_v10 }
 0x328   :  { %v1092_v46 = vpop.permute.xlu0 %1091 }
 0x329   :  { %1171 = vperm.xlu1 %1534, %v1129_v33   ;;  %v1131_v48 = vsub.f32 %v2002_v42, %v1092_v46 }
 0x32a   :  { %v2083_v29 = vpop.permute.xlu1 %969 }
 0x32b   :  { %v1031_v3 = vmul.f32 %v2083_v29, %v1778_v16 }
 0x32d   :  { %1161 = vperm.xlu1 %1534, %v1127_v20  }
 0x32e   :  { %v2086_v40 = vpop.permute.xlu1 %984 }
 0x331   :  { %1191 = vperm.xlu1 %1534, %v1133_v37  }
 0x332   :  { %v2089_v44 = vpop.permute.xlu1 %974 }
 0x335   :  { %1181 = vperm.xlu1 %1534, %v1131_v48  }
 0x336   :  { %v1090_v58 = vpop.permute.xlu1 %1089 }
 0x337   :  { %v1130_v54 = vsub.f32 %v1979_v14, %v1090_v58  ;;  %v1100_v47 = vpop.permute.xlu0 %1099 }
 0x338   :  { %v1135_v56 = vsub.f32 %v2037_v28, %v1100_v47 }
 0x339   :  { %1176 = vperm.xlu0 %1535, %v1130_v54  }
 0x33a   :  { %v1086_v24 = vpop.permute.xlu1 %1085  ;;  %1201 = vperm.xlu1 %1534, %v1135_v56  }
 0x33b   :  { %v1128_v59 = vsub.f32 %v1997_v41, %v1086_v24  ;;  %v1104_v51 = vpop.permute.xlu0 %1103 }
 0x33c   :  { %v1137_v17 = vsub.f32 %v2048_v11, %v1104_v51 }
 0x33d   :  { %1166 = vperm.xlu0 %1535, %v1128_v59  }
 0x33e   :  { %v1098_v61 = vpop.permute.xlu1 %1097  ;;  %1211 = vperm.xlu1 %1534, %v1137_v17  }
 0x33f   :  { %v1134_v42 = vsub.f32 %v2021_v22, %v1098_v61 }
 0x341   :  { %1196 = vperm.xlu0 %1535, %v1134_v42  }
 0x342   :  { %v1094_v34 = vpop.permute.xlu1 %1093 }
 0x343   :  { %v1132_v14 = vsub.f32 %v2029_v12, %v1094_v34 }
 0x345   :  { %1186 = vperm.xlu0 %1535, %v1132_v14  }
 0x346   :  { %v1102_v53 = vpop.permute.xlu1 %1101 }
 0x347   :  { %v1136_v28 = vsub.f32 %v2043_v49, %v1102_v53 }
 0x349   :  { %1206 = vperm.xlu0 %1535, %v1136_v28  }
 0x34a   :  { %v1106_v50 = vpop.permute.xlu1 %1105 }
 0x34b   :  { %v1138_v41 = vsub.f32 %v2059_v4, %v1106_v50 }
 0x34c   :  { %v990_v49 = vpop.permute.xlu0 %989 }
 0x34d   :  { %1216 = vperm.xlu0 %1535, %v1138_v41   ;;  %v1035_v16 = vmul.f32 %v990_v49, %v1814_v36 }
 0x34e   :  { %v2100_v13 = vpop.permute.xlu1 %994 }
 0x350   :  { %v1000_v4 = vpop.permute.xlu0 %999 }
 0x351   :  { %v1037_v10 = vmul.f32 %v1000_v4, %v1805_v30  ;;  %v1034_v30 = vmul.f32 %v2086_v40, %v1783_v18 }
 0x352   :  { %v2102_v11 = vpop.permute.xlu1 %1004 }
 0x354   :  { %v1010_v26 = vpop.permute.xlu0 %1009 }
 0x355   :  { %v1039_v14 = vmul.f32 %v1010_v26, %v1850_v62 }
 0x356   :  { %v2104_v8 = vpop.permute.xlu1 %1014 }
 0x358   :  { %v1020_v19 = vpop.permute.xlu0 %1019 }
 0x359   :  { %v1041_v18 = vmul.f32 %v1020_v19, %v1841_v52 }
 0x35a   :  { %v2106_v22 = vpop.permute.xlu1 %1024 }
 0x381   :  { %v1152_v12 = vpop.permute.xlu1 %1151 }
 0x382   :  { %v1221_v35 = vadd.f32 %v1152_v12, %v1029_v25  ;;  %v1032_v25 = vmul.f32 %v2089_v44, %v1793_v23  ;;  %v1038_v23 = vmul.f32 %v2102_v11, %v1819_v38  ;;  %v1036_v38 = vmul.f32 %v2100_v13, %v1829_v43 }
 0x384   :  { %vm1237_vm2 = vcmp.ge.f32.partialorder %v1221_v35, 0.0  ;;  %v1253_v9 = vmul.f32 0.2, %v1221_v35 }
 0x386   :  { %v1269_v32 = vsel %vm1237_vm2, %v1221_v35, %v1253_v9 }
 0x387   :  { %1285 = vst.msk [vmem:[%s2202_s3 + $0x10] sm:$0xff] %vm690_vm1, %v1269_v32 }
 0x39c   :  { %v1142_v15 = vpop.permute.xlu0 %1141 }
 0x39d   :  { %v1219_v5 = vadd.f32 %v1142_v15, %v1027_v21 }
 0x39f   :  { %vm1235_vm3 = vcmp.ge.f32.partialorder %v1219_v5, 0.0  ;;  %v1251_v55 = vmul.f32 0.2, %v1219_v5 }
 0x3a0   :  { %v1157_v60 = vpop.permute.xlu0 %1156 }
 0x3a1   :  { %v1267_v27 = vsel %vm1235_vm3, %v1219_v5, %v1251_v55  ;;  %v1222_v33 = vadd.f32 %v1157_v60, %v1030_v57  ;;  %v1040_v60 = vmul.f32 %v2104_v8, %v1865_v6 }
 0x3a2   :  { %1283 = vst.msk [vmem:[%s2202_s3] sm:$0xff] %vm690_vm1, %v1267_v27 }
 0x3a3   :  { %vm1238_vm4 = vcmp.ge.f32.partialorder %v1222_v33, 0.0  ;;  %v1254_v63 = vmul.f32 0.2, %v1222_v33 }
 0x3a4   :  { %v1147_v45 = vpop.permute.xlu1 %1146 }
 0x3a5   :  { %v1270_v20 = vsel %vm1238_vm4, %v1222_v33, %v1254_v63  ;;  %v1220_v37 = vadd.f32 %v1147_v45, %v1028_v39  ;;  %v1042_v39 = vmul.f32 %v2106_v22, %v1855_v0 }
 0x3a6   :  { %1286 = vst.msk [vmem:[%s2202_s3 + $0x18] sm:$0xff] %vm690_vm1, %v1270_v20 }
 0x3a7   :  { %vm1236_vm5 = vcmp.ge.f32.partialorder %v1220_v37, 0.0  ;;  %v1252_v7 = vmul.f32 0.2, %v1220_v37 }
 0x3a8   :  { %v1172_v46 = vpop.permute.xlu1 %1171 }
 0x3a9   :  { %v1268_v48 = vsel %vm1236_vm5, %v1220_v37, %v1252_v7  ;;  %v1225_v58 = vadd.f32 %v1172_v46, %v1033_v2 }
 0x3aa   :  { %1284 = vst.msk [vmem:[%s2202_s3 + $0x8] sm:$0xff] %vm690_vm1, %v1268_v48 }
 0x3ab   :  { %vm1241_vm6 = vcmp.ge.f32.partialorder %v1225_v58, 0.0  ;;  %v1257_v1 = vmul.f32 0.2, %v1225_v58 }
 0x3ac   :  { %v1162_v54 = vpop.permute.xlu1 %1161 }
 0x3ad   :  { %v1273_v47 = vsel %vm1241_vm6, %v1225_v58, %v1257_v1  ;;  %v1223_v56 = vadd.f32 %v1162_v54, %v1031_v3 }
 0x3ae   :  { %1289 = vst.msk [vmem:[%s2202_s3 + $0x30] sm:$0xff] %vm690_vm1, %v1273_v47 }
 0x3af   :  { %vm1239_vm7 = vcmp.ge.f32.partialorder %v1223_v56, 0.0  ;;  %v1255_v31 = vmul.f32 0.2, %v1223_v56 }
 0x3b0   :  { %v1192_v24 = vpop.permute.xlu1 %1191 }
 0x3b1   :  { %v1271_v59 = vsel %vm1239_vm7, %v1223_v56, %v1255_v31  ;;  %v1229_v51 = vadd.f32 %v1192_v24, %v1037_v10 }
 0x3b2   :  { %1287 = vst.msk [vmem:[%s2202_s3 + $0x20] sm:$0xff] %vm690_vm1, %v1271_v59 }
 0x3b3   :  { %vm1245_vm8 = vcmp.ge.f32.partialorder %v1229_v51, 0.0  ;;  %v1261_v29 = vmul.f32 0.2, %v1229_v51 }
 0x3b4   :  { %v1182_v17 = vpop.permute.xlu1 %1181 }
 0x3b5   :  { %v1277_v61 = vsel %vm1245_vm8, %v1229_v51, %v1261_v29  ;;  %v1227_v42 = vadd.f32 %v1182_v17, %v1035_v16 }
 0x3b6   :  { %1293 = vst.msk [vmem:[%s2202_s3 + $0x50] sm:$0xff] %vm690_vm1, %v1277_v61 }
 0x3b7   :  { %vm1243_vm9 = vcmp.ge.f32.partialorder %v1227_v42, 0.0  ;;  %v1259_v34 = vmul.f32 0.2, %v1227_v42 }
 0x3b8   :  { %v1177_v53 = vpop.permute.xlu0 %1176 }
 0x3b9   :  { %v1275_v28 = vsel %vm1243_vm9, %v1227_v42, %v1259_v34  ;;  %v1226_v36 = vadd.f32 %v1177_v53, %v1034_v30  ;;  %v1202_v50 = vpop.permute.xlu1 %1201 }
 0x3ba   :  { %1291 = vst.msk [vmem:[%s2202_s3 + $0x40] sm:$0xff] %vm690_vm1, %v1275_v28  ;;  %v1231_v41 = vadd.f32 %v1202_v50, %v1039_v14 }
 0x3bb   :  { %vm1242_vm10 = vcmp.ge.f32.partialorder %v1226_v36, 0.0  ;;  %v1258_v12 = vmul.f32 0.2, %v1226_v36 }
 0x3bc   :  { %vm1247_vm11 = vcmp.ge.f32.partialorder %v1231_v41, 0.0  ;;  %v1263_v40 = vmul.f32 0.2, %v1231_v41  ;;  %v1167_v62 = vpop.permute.xlu0 %1166 }
 0x3bd   :  { %v1274_v35 = vsel %vm1242_vm10, %v1226_v36, %v1258_v12  ;;  %v1224_v9 = vadd.f32 %v1167_v62, %v1032_v25  ;;  %v1212_v49 = vpop.permute.xlu1 %1211 }
 0x3be   :  { %1290 = vst.msk [vmem:[%s2202_s3 + $0x38] sm:$0xff] %vm690_vm1, %v1274_v35  ;;  %v1279_v32 = vsel %vm1247_vm11, %v1231_v41, %v1263_v40  ;;  %v1233_v4 = vadd.f32 %v1212_v49, %v1041_v18 }
 0x3bf   :  { %1295 = vst.msk [vmem:[%s2202_s3 + $0x60] sm:$0xff] %vm690_vm1, %v1279_v32  ;;  %vm1240_vm12 = vcmp.ge.f32.partialorder %v1224_v9, 0.0  ;;  %v1256_v52 = vmul.f32 0.2, %v1224_v9 }
 0x3c0   :  { %vm1249_vm13 = vcmp.ge.f32.partialorder %v1233_v4, 0.0  ;;  %v1265_v44 = vmul.f32 0.2, %v1233_v4  ;;  %v1197_v26 = vpop.permute.xlu0 %1196 }
 0x3c1   :  { %v1272_v19 = vsel %vm1240_vm12, %v1224_v9, %v1256_v52  ;;  %v1230_v21 = vadd.f32 %v1197_v26, %v1038_v23 }
 0x3c2   :  { %1288 = vst.msk [vmem:[%s2202_s3 + $0x28] sm:$0xff] %vm690_vm1, %v1272_v19  ;;  %v1281_v15 = vsel %vm1249_vm13, %v1233_v4, %v1265_v44 }
 0x3c3   :  { %1297 = vst.msk [vmem:[%s2202_s3 + $0x70] sm:$0xff] %vm690_vm1, %v1281_v15  ;;  %vm1246_vm14 = vcmp.ge.f32.partialorder %v1230_v21, 0.0  ;;  %v1262_v11 = vmul.f32 0.2, %v1230_v21 }
 0x3c4   :  { %v1187_v5 = vpop.permute.xlu0 %1186 }
 0x3c5   :  { %v1278_v57 = vsel %vm1246_vm14, %v1230_v21, %v1262_v11  ;;  %v1228_v55 = vadd.f32 %v1187_v5, %v1036_v38 }
 0x3c6   :  { %1294 = vst.msk [vmem:[%s2202_s3 + $0x58] sm:$0xff] %vm690_vm1, %v1278_v57 }
 0x3c7   :  { %vm1244_vm15 = vcmp.ge.f32.partialorder %v1228_v55, 0.0  ;;  %v1260_v43 = vmul.f32 0.2, %v1228_v55 }
 0x3c8   :  { %v1207_v13 = vpop.permute.xlu0 %1206 }
 0x3c9   :  { %v1276_v27 = vsel %vm1244_vm15, %v1228_v55, %v1260_v43  ;;  %v1232_v33 = vadd.f32 %v1207_v13, %v1040_v60 }
 0x3ca   :  { %1292 = vst.msk [vmem:[%s2202_s3 + $0x48] sm:$0xff] %vm690_vm1, %v1276_v27 }
 0x3cb   :  { %vm1248_vm0 = vcmp.ge.f32.partialorder %v1232_v33, 0.0  ;;  %v1264_v63 = vmul.f32 0.2, %v1232_v33 }
 0x3cc   :  { %v1217_v45 = vpop.permute.xlu0 %1216 }
 0x3cd   :  { %v1280_v20 = vsel %vm1248_vm0, %v1232_v33, %v1264_v63  ;;  %v1234_v37 = vadd.f32 %v1217_v45, %v1042_v39 }
 0x3ce   :  { %1296 = vst.msk [vmem:[%s2202_s3 + $0x68] sm:$0xff] %vm690_vm1, %v1280_v20 }
 0x3cf   :  { %vm1250_vm2 = vcmp.ge.f32.partialorder %v1234_v37, 0.0  ;;  %v1266_v6 = vmul.f32 0.2, %v1234_v37 }
 0x3d1   :  { %v1282_v8 = vsel %vm1250_vm2, %v1234_v37, %v1266_v6 }
 0x3d2   :  { %1298 = vst.msk [vmem:[%s2202_s3 + $0x78] sm:$0xff] %vm690_vm1, %v1282_v8 }

</bundles_post_ra>
